<compile_context>
chip_gen: v6e
topology: v6e:2x2x1
jax: 0.10.0
libtpu: 0.0.40
codegen_flags: <defaults>
</compile_context>

<pallas_src>
import jax
import jax.numpy as jnp
from jax.experimental import pallas as pl
from jax.experimental.pallas import tpu as pltpu

_TILE = 16  # batch-tile granularity: safe for f32 (8) and bf16 (16) sublane packing


def _round_up(x, m):
    return ((x + m - 1) // m) * m


def _leaky_relu(x, slope=0.2):
    return jnp.where(x > 0, x, slope * x)


def mlp_disc_kernel(x_ref, w1_ref, b1_ref, w2_ref, b2_ref, w3_ref, b3_ref, o_ref):
    # x_ref: (bm, IN) tile; weights fully resident in VMEM (single-buffered).
    mm_dt = w1_ref.dtype  # matmul input dtype (f32 or bf16); accumulation is f32.

    h1 = jnp.dot(x_ref[...], w1_ref[...], preferred_element_type=jnp.float32)
    h1 = _leaky_relu(h1 + b1_ref[...])          # implicit (1,H1) row broadcast, f32

    h2 = jnp.dot(h1.astype(mm_dt), w2_ref[...], preferred_element_type=jnp.float32)
    h2 = _leaky_relu(h2 + b2_ref[...])

    out = jnp.dot(h2.astype(mm_dt), w3_ref[...], preferred_element_type=jnp.float32)
    o_ref[...] = (out + b3_ref[...]).astype(o_ref.dtype)   # (bm, 128) lane-dense store


def mlp_discriminator(img, params, *, bm=128, matmul_dtype=jnp.float32):
    """img: (B, C, H, W) float32. Returns validity logits (B, 1) float32."""
    B = img.shape[0]
    in_feat = int(img.shape[1] * img.shape[2] * img.shape[3])
    x = img.reshape(B, in_feat)  # row-major flatten == torch .view(B, -1)

    w1, b1, w2, b2, w3, b3 = params
    d1, d2, d_out = w1.shape[1], w2.shape[1], w3.shape[1]

    # Lane-dense final layer: zero-pad the (256 -> 1) projection to (256 -> 128).
    out_pad = max(128, _round_up(d_out, 128))
    w3p = jnp.zeros((d2, out_pad), w3.dtype).at[:, :d_out].set(w3)
    b3p = jnp.zeros((1, out_pad), b3.dtype).at[:, :d_out].set(b3)

    # Batch tiling: multiple of _TILE, no larger than the padded batch.
    bm_eff = max(_TILE, min(_round_up(bm, _TILE), _round_up(B, _TILE)))
    # Prefer >=2 parallel grid steps (v7x has 2 TensorCores) when batch allows it.
    if _round_up(B, bm_eff) // bm_eff < 2 and _round_up(B, _TILE) >= 2 * _TILE:
        bm_eff = max(_TILE, (_round_up(B, _TILE) // 2 // _TILE) * _TILE)
    b_pad = _round_up(B, bm_eff)
    if b_pad != B:
        x = jnp.pad(x, ((0, b_pad - B), (0, 0)))

    mm_dt = jnp.dtype(matmul_dtype)
    x_mm = x.astype(mm_dt)
    w1_mm, w2_mm, w3_mm = w1.astype(mm_dt), w2.astype(mm_dt), w3p.astype(mm_dt)

    grid = (b_pad // bm_eff,)

    flops = int(2 * b_pad * (in_feat * d1 + d1 * d2 + d2 * out_pad))
    bytes_accessed = int(
        b_pad * in_feat * mm_dt.itemsize                                   # x
        + (in_feat * d1 + d1 * d2 + d2 * out_pad) * mm_dt.itemsize         # weights
        + (d1 + d2 + out_pad) * 4                                          # biases (f32)
        + b_pad * out_pad * 4                                              # output
    )

    resident = pl.Buffered(1)  # constant-index operands: no double buffering

    out = pl.pallas_call(
        mlp_disc_kernel,
        out_shape=jax.ShapeDtypeStruct((b_pad, out_pad), jnp.float32),
        grid_spec=pltpu.PrefetchScalarGridSpec(
            num_scalar_prefetch=0,
            grid=grid,
            in_specs=[
                pl.BlockSpec((bm_eff, in_feat), lambda i: (i, 0)),                      # x tile
                pl.BlockSpec((in_feat, d1), lambda i: (0, 0), pipeline_mode=resident),  # W1
                pl.BlockSpec((1, d1), lambda i: (0, 0), pipeline_mode=resident),        # b1
                pl.BlockSpec((d1, d2), lambda i: (0, 0), pipeline_mode=resident),       # W2
                pl.BlockSpec((1, d2), lambda i: (0, 0), pipeline_mode=resident),        # b2
                pl.BlockSpec((d2, out_pad), lambda i: (0, 0), pipeline_mode=resident),  # W3 (padded)
                pl.BlockSpec((1, out_pad), lambda i: (0, 0), pipeline_mode=resident),   # b3 (padded)
            ],
            out_specs=pl.BlockSpec((bm_eff, out_pad), lambda i: (i, 0)),
        ),
        compiler_params=pltpu.CompilerParams(
            dimension_semantics=("parallel",),
        ),
        cost_estimate=pl.CostEstimate(
            flops=flops, transcendentals=0, bytes_accessed=bytes_accessed),
    )(x_mm, w1_mm, b1, w2_mm, b2, w3_mm, b3p)

    return out[:B, :d_out]


def init_params(key, in_feat, h1=512, h2=256, out=1):
    """Deterministic PyTorch-style Linear init: U(-1/sqrt(fan_in), 1/sqrt(fan_in))."""
    ks = jax.random.split(key, 6)

    def lin(kw, kb, fan_in, fan_out):
        bound = 1.0 / jnp.sqrt(fan_in)
        w = jax.random.uniform(kw, (fan_in, fan_out), jnp.float32, -bound, bound)
        b = jax.random.uniform(kb, (1, fan_out), jnp.float32, -bound, bound)
        return w, b

    w1, b1 = lin(ks[0], ks[1], in_feat, h1)
    w2, b2 = lin(ks[2], ks[3], h1, h2)
    w3, b3 = lin(ks[4], ks[5], h2, out)
    return (w1, b1, w2, b2, w3, b3)


def reference(img, params):
    w1, b1, w2, b2, w3, b3 = params
    x = img.reshape(img.shape[0], -1)
    h1 = _leaky_relu(x @ w1 + b1)
    h2 = _leaky_relu(h1 @ w2 + b2)
    return h2 @ w3 + b3


if __name__ == "__main__":
    key = jax.random.PRNGKey(0)
    k_img1, k_img2, k_par = jax.random.split(key, 3)

    C, H, W = 4, 16, 16          # img_shape = (4, 16, 16) -> in_feat = 1024
    in_feat = C * H * W
    params = init_params(k_par, in_feat)

    # --- check 1: default path (f32, bm auto-clamped, >=2 parallel grid steps) ---
    B = 32
    img = jax.random.normal(k_img1, (B, C, H, W), dtype=jnp.float32)
    out = jax.block_until_ready(mlp_discriminator(img, params))
    ref = reference(img, params)
    assert out.shape == (B, 1)
    assert jnp.allclose(out, ref, atol=1e-4, rtol=1e-4), "f32 mismatch vs reference"

    # --- check 2: ragged batch + explicit small tile (padding + 3-step grid) -----
    B2 = 40
    img2 = jax.random.normal(k_img2, (B2, C, H, W), dtype=jnp.float32)
    out2 = jax.block_until_ready(mlp_discriminator(img2, params, bm=16))
    ref2 = reference(img2, params)
    assert out2.shape == (B2, 1)
    assert jnp.allclose(out2, ref2, atol=1e-4, rtol=1e-4), "padded-batch mismatch"

    # --- check 3: bf16 MXU inputs (v6e/v7x fast path), f32 accumulation ----------
    out3 = jax.block_until_ready(
        mlp_discriminator(img, params, matmul_dtype=jnp.bfloat16))
    assert out3.shape == (B, 1)
    assert jnp.allclose(out3, ref, atol=1e-1, rtol=1e-1), "bf16 path mismatch"

    print("KERNEL_OK")
</pallas_src>

<mosaic_0001>
module attributes {stable_mosaic.version = 11 : i64} {
  func.func @mlp_disc_kernel(%arg0: i32, %arg1: memref<16x1024xf32, #tpu.memory_space<vmem>>, %arg2: memref<1024x512xf32, #tpu.memory_space<vmem>>, %arg3: memref<1x512xf32, #tpu.memory_space<vmem>>, %arg4: memref<512x256xf32, #tpu.memory_space<vmem>>, %arg5: memref<1x256xf32, #tpu.memory_space<vmem>>, %arg6: memref<256x128xf32, #tpu.memory_space<vmem>>, %arg7: memref<1x128xf32, #tpu.memory_space<vmem>>, %arg8: memref<16x128xf32, #tpu.memory_space<vmem>>) attributes {dimension_semantics = [#tpu.dimension_semantics<parallel>], iteration_bounds = array<i64: 2>, scalar_prefetch = 0 : i64, scratch_operands = 0 : i64, tpu.core_type = #tpu.core_type<tc>, window_params = [{transform_indices = @transform_0, window_bounds = array<i64: 16, 1024>}, {pipeline_mode = #tpu.pipeline_mode<synchronous>, transform_indices = @transform_1, window_bounds = array<i64: 1024, 512>}, {pipeline_mode = #tpu.pipeline_mode<synchronous>, transform_indices = @transform_2, window_bounds = array<i64: 1, 512>}, {pipeline_mode = #tpu.pipeline_mode<synchronous>, transform_indices = @transform_3, window_bounds = array<i64: 512, 256>}, {pipeline_mode = #tpu.pipeline_mode<synchronous>, transform_indices = @transform_4, window_bounds = array<i64: 1, 256>}, {pipeline_mode = #tpu.pipeline_mode<synchronous>, transform_indices = @transform_5, window_bounds = array<i64: 256, 128>}, {pipeline_mode = #tpu.pipeline_mode<synchronous>, transform_indices = @transform_6, window_bounds = array<i64: 1, 128>}, {transform_indices = @transform_7, window_bounds = array<i64: 16, 128>}]} {
    %c0 = arith.constant 0 : index
    %c0_0 = arith.constant 0 : index
    %0 = vector.load %arg1[%c0, %c0_0] : memref<16x1024xf32, #tpu.memory_space<vmem>>, vector<16x1024xf32>
    %c0_1 = arith.constant 0 : index
    %c0_2 = arith.constant 0 : index
    %1 = vector.load %arg2[%c0_1, %c0_2] : memref<1024x512xf32, #tpu.memory_space<vmem>>, vector<1024x512xf32>
    %cst = arith.constant dense<0.000000e+00> : vector<16x512xf32>
    %2 = tpu.matmul %0, %1, %cst {dimension_numbers = #tpu.dot_dimension_numbers<[1], [0], [0], [1], [0, 0, 1, 1], [], []>} : vector<16x1024xf32>, vector<1024x512xf32>, vector<16x512xf32> -> vector<16x512xf32>
    %c0_3 = arith.constant 0 : index
    %c0_4 = arith.constant 0 : index
    %3 = vector.load %arg3[%c0_3, %c0_4] : memref<1x512xf32, #tpu.memory_space<vmem>>, vector<1x512xf32>
    %4 = vector.broadcast %3 : vector<1x512xf32> to vector<16x512xf32>
    %5 = arith.addf %2, %4 : vector<16x512xf32>
    %cst_5 = arith.constant 0.000000e+00 : f32
    %6 = vector.broadcast %cst_5 : f32 to vector<16x512xf32>
    %7 = arith.cmpf ogt, %5, %6 : vector<16x512xf32>
    %cst_6 = arith.constant 2.000000e-01 : f32
    %8 = vector.broadcast %cst_6 : f32 to vector<16x512xf32>
    %9 = arith.mulf %8, %5 : vector<16x512xf32>
    %10 = arith.select %7, %5, %9 : vector<16x512xi1>, vector<16x512xf32>
    %c0_7 = arith.constant 0 : index
    %c0_8 = arith.constant 0 : index
    %11 = vector.load %arg4[%c0_7, %c0_8] : memref<512x256xf32, #tpu.memory_space<vmem>>, vector<512x256xf32>
    %cst_9 = arith.constant dense<0.000000e+00> : vector<16x256xf32>
    %12 = tpu.matmul %10, %11, %cst_9 {dimension_numbers = #tpu.dot_dimension_numbers<[1], [0], [0], [1], [0, 0, 1, 1], [], []>} : vector<16x512xf32>, vector<512x256xf32>, vector<16x256xf32> -> vector<16x256xf32>
    %c0_10 = arith.constant 0 : index
    %c0_11 = arith.constant 0 : index
    %13 = vector.load %arg5[%c0_10, %c0_11] : memref<1x256xf32, #tpu.memory_space<vmem>>, vector<1x256xf32>
    %14 = vector.broadcast %13 : vector<1x256xf32> to vector<16x256xf32>
    %15 = arith.addf %12, %14 : vector<16x256xf32>
    %cst_12 = arith.constant 0.000000e+00 : f32
    %16 = vector.broadcast %cst_12 : f32 to vector<16x256xf32>
    %17 = arith.cmpf ogt, %15, %16 : vector<16x256xf32>
    %cst_13 = arith.constant 2.000000e-01 : f32
    %18 = vector.broadcast %cst_13 : f32 to vector<16x256xf32>
    %19 = arith.mulf %18, %15 : vector<16x256xf32>
    %20 = arith.select %17, %15, %19 : vector<16x256xi1>, vector<16x256xf32>
    %c0_14 = arith.constant 0 : index
    %c0_15 = arith.constant 0 : index
    %21 = vector.load %arg6[%c0_14, %c0_15] : memref<256x128xf32, #tpu.memory_space<vmem>>, vector<256x128xf32>
    %cst_16 = arith.constant dense<0.000000e+00> : vector<16x128xf32>
    %22 = tpu.matmul %20, %21, %cst_16 {dimension_numbers = #tpu.dot_dimension_numbers<[1], [0], [0], [1], [0, 0, 1, 1], [], []>} : vector<16x256xf32>, vector<256x128xf32>, vector<16x128xf32> -> vector<16x128xf32>
    %c0_17 = arith.constant 0 : index
    %c0_18 = arith.constant 0 : index
    %23 = vector.load %arg7[%c0_17, %c0_18] : memref<1x128xf32, #tpu.memory_space<vmem>>, vector<1x128xf32>
    %24 = vector.broadcast %23 : vector<1x128xf32> to vector<16x128xf32>
    %25 = arith.addf %22, %24 : vector<16x128xf32>
    %c0_19 = arith.constant 0 : index
    %c0_20 = arith.constant 0 : index
    %26 = vector.load %arg8[%c0_19, %c0_20] : memref<16x128xf32, #tpu.memory_space<vmem>>, vector<16x128xf32>
    tpu.vector_store %arg8[%c0_19, %c0_20], %25 {strides = array<i32>} : memref<16x128xf32, #tpu.memory_space<vmem>>, vector<16x128xf32>,
    return
  }
  func.func @transform_0(%arg0: i32) -> (i32, i32) {
    %c0_i32 = arith.constant 0 : i32
    %c0_i32_0 = arith.constant 0 : i32
    return %arg0, %c0_i32 : i32, i32
  }
  func.func @transform_1(%arg0: i32) -> (i32, i32) {
    %c0_i32 = arith.constant 0 : i32
    %c0_i32_0 = arith.constant 0 : i32
    %c0_i32_1 = arith.constant 0 : i32
    return %c0_i32, %c0_i32_0 : i32, i32
  }
  func.func @transform_2(%arg0: i32) -> (i32, i32) {
    %c0_i32 = arith.constant 0 : i32
    %c0_i32_0 = arith.constant 0 : i32
    %c0_i32_1 = arith.constant 0 : i32
    return %c0_i32, %c0_i32_0 : i32, i32
  }
  func.func @transform_3(%arg0: i32) -> (i32, i32) {
    %c0_i32 = arith.constant 0 : i32
    %c0_i32_0 = arith.constant 0 : i32
    %c0_i32_1 = arith.constant 0 : i32
    return %c0_i32, %c0_i32_0 : i32, i32
  }
  func.func @transform_4(%arg0: i32) -> (i32, i32) {
    %c0_i32 = arith.constant 0 : i32
    %c0_i32_0 = arith.constant 0 : i32
    %c0_i32_1 = arith.constant 0 : i32
    return %c0_i32, %c0_i32_0 : i32, i32
  }
  func.func @transform_5(%arg0: i32) -> (i32, i32) {
    %c0_i32 = arith.constant 0 : i32
    %c0_i32_0 = arith.constant 0 : i32
    %c0_i32_1 = arith.constant 0 : i32
    return %c0_i32, %c0_i32_0 : i32, i32
  }
  func.func @transform_6(%arg0: i32) -> (i32, i32) {
    %c0_i32 = arith.constant 0 : i32
    %c0_i32_0 = arith.constant 0 : i32
    %c0_i32_1 = arith.constant 0 : i32
    return %c0_i32, %c0_i32_0 : i32, i32
  }
  func.func @transform_7(%arg0: i32) -> (i32, i32) {
    %c0_i32 = arith.constant 0 : i32
    %c0_i32_0 = arith.constant 0 : i32
    return %arg0, %c0_i32 : i32, i32
  }
}

</mosaic_0001>

<bundles_post_ra>
// kernel: tpu_custom_call.1
= control target key start
LH: loop header
LB: loop body
LE: loop exit
PB: predicated region body
PF: predicated region fallthrough
CT: control target
= control target key end

     0   :  { %s3074_s0 = inlined_call_operand.hbm [shape: f32[32,1024], index: 0, kind: input, shape index: {}]   ;;  %s3075_s1 = inlined_call_operand.hbm [shape: f32[1024,512], index: 1, kind: input, shape index: {}]   ;;  %s3076_s2 = inlined_call_operand.hbm [shape: f32[1,512], index: 2, kind: input, shape index: {}]   ;;  %s3077_s3 = inlined_call_operand.hbm [shape: f32[512,256], index: 3, kind: input, shape index: {}]   ;;  %s3078_s4 = inlined_call_operand.hbm [shape: f32[1,256], index: 4, kind: input, shape index: {}]   ;;  %s3079_s5 = inlined_call_operand.hbm [shape: f32[256,128], index: 5, kind: input, shape index: {}]   ;;  %s3080_s6 = inlined_call_operand.hbm [shape: f32[1,128], index: 6, kind: input, shape index: {}]   ;;  %s3081_s7 = inlined_call_operand.hbm [shape: f32[32,128], index: 7, kind: output, shape index: {}]  }
   0x1   :  { %3086 = sst [smem:[#allocation20_spill]] %s3075_s1 }
   0x2   :  { %12 = vsyncpa [#allocation3], 0 }
   0x3   :  { %14 = vsyncpa [#allocation3 + $0x1], 0 }
   0x4   :  { %15 = vsyncpa [#allocation6], 0 }
   0x5   :  { %16 = vsyncpa [#allocation9], 0 }
   0x6   :  { %17 = vsyncpa [#allocation12], 0 }
   0x7   :  { %18 = vsyncpa [#allocation4], 0 }
   0x8   :  { %20 = vsyncpa [#allocation4 + $0x1], 0  ;;  %s2691_s24 = smov 0   ;;  %s2693_s25 = smov 0  }
   0x9   :  { %s2695_s26 = smov 0   ;;  %s2697_s27 = smov 0  }
   0xa LB: > { %s2633_s28 = smov [#allocation5]   ;;  %s2712_s30 = sadd.s32 4294967295, %s2631_s27   ;;  %s2631_s27 = sphi %s2697_s27, %s3111_s27   ;;  %s2627_s26 = sphi %s2695_s26, %s3110_s26   ;;  %s2623_s25 = sphi %s2693_s25, %s3109_s25   ;;  %s2619_s24 = sphi %s2691_s24, %s3108_s24  }
   0xb   : > { %s221_s29 = sshll.u32 %s2633_s28, 4  ;;  %p2138_p0 = scmp.ge.s32.totalorder %s2631_s27, 1  ;;  %s222_s29 = int_to_ptr.vmem [resolvable:$true] %s221_s29 }
   0xc   : > { %p3082_p1 = scmp.eq.s32.totalorder %s2712_s30, 0  ;;  %p209_p2 = scmp.lt.s32.totalorder %s2631_s27, 3 }
   0xd   : > { %s2634_s9 = smov [#allocation8]   ;;  %s2635_s12 = smov [#allocation11]  }
   0xe   : > { %p2717_p3 = pnand %p2138_p0, %p209_p2  ;;  %s245_s10 = sshll.u32 %s2634_s9, 4  ;;  %s2730_s10 = int_to_ptr.vmem [resolvable:$true] %s245_s10 }
   0xf   : > { %s2732_s13 = sshll.u32 %s2635_s12, 4  ;;  %s2382_s15 = scalar_lea.vmem %s222_s29, 65536  ;;  %s270_s13 = int_to_ptr.vmem [resolvable:$true] %s2732_s13 }
  0x10   : > { %s3087_s8 = scalar_select %p2717_p3, 1, 0 }
  0x11   : > { %p2266_p5 = pneg %p2717_p3  ;;  %p2383_p8 = scmp.ne.s32.totalorder %s222_s29, %s2382_s15 }
  0x12   : > { %p2390_p11 = scmp.lt.s32.totalorder %s222_s29, %s222_s29  ;;  %p2391_p12 = scmp.lt.s32.totalorder %s2382_s15, %s2382_s15 }
  0x13   : > { %p2726_p6 = pnand %p2266_p5, %p3082_p1 }
  0x14   : > { %p2392_p13 = por %p2391_p12, %p2390_p11 }
  0x15   : > { %p2736_p7 = pneg %p2726_p6 }
  0x17   : > { %p2385_p9 = pnand %p2383_p8, %p2736_p7 }
  0x19   : > { %p2386_p10 = pneg %p2385_p9 }
  0x1b   : > { %p2393_p0 = pnand %p2392_p13, %p2386_p10 }
  0x1d   : > { %2396 = shalt.err (!%p2393_p0)
}
  0x1e   : > { %s2636_s16 = smov 512   ;;  %s2637_s17 = smov 32  }
  0x1f   : > { %s3090_s1 = sld [smem:[#allocation20_spill]]  ;;  %s2408_s20 = scalar_lea.vmem %s2730_s10, 16384 }
  0x20   : > { %p2409_p2 = scmp.ne.s32.totalorder %s2730_s10, %s2408_s20  ;;  %p2416_p9 = scmp.lt.s32.totalorder %s2730_s10, %s2730_s10 }
  0x21   : > { %p2417_p10 = scmp.lt.s32.totalorder %s2408_s20, %s2408_s20 }
  0x22   : > { %p2411_p5 = pnand %p2409_p2, %p2736_p7 }
  0x23   : > { %p2418_p11 = por %p2417_p10, %p2416_p9 }
  0x24   : > { %p2412_p8 = pneg %p2411_p5 }
  0x25   : > { %2269 = dma.hbm_to_vmem [thread:$0]  (!%p2726_p6), %s3090_s1, 65536, %s222_s29, [#allocation6], %s2636_s16, %s2636_s16, %s2637_s17  }
  0x26   : > { %p2419_p12 = pnand %p2418_p11, %p2412_p8 }
  0x28   : > { %2422 = shalt.err (!%p2419_p12)
}
  0x29   : > { %s2638_s21 = smov 256   ;;  %s2639_s22 = smov 16  }
  0x2a   : > { %2275 = dma.hbm_to_vmem [thread:$0]  (!%p2726_p6), %s3077_s3, 16384, %s2730_s10, [#allocation9], %s2638_s21, %s2638_s21, %s2639_s22  }
  0x2b   : > { %s2434_s29 = scalar_lea.vmem %s270_s13, 4096  ;;  %p2442_p5 = scmp.lt.s32.totalorder %s270_s13, %s270_s13 }
  0x2c   : > { %p2435_p13 = scmp.ne.s32.totalorder %s270_s13, %s2434_s29  ;;  %p2443_p8 = scmp.lt.s32.totalorder %s2434_s29, %s2434_s29 }
  0x2e   : > { %p2437_p0 = pnand %p2435_p13, %p2736_p7  ;;  %p2444_p9 = por %p2443_p8, %p2442_p5 }
  0x30   : > { %p2438_p2 = pneg %p2437_p0 }
  0x32   : > { %p2445_p10 = pnand %p2444_p9, %p2438_p2 }
  0x34   : > { %2448 = shalt.err (!%p2445_p10)
}
  0x35   : > { %s2640_s9 = smov 128   ;;  %s2641_s12 = smov 8  }
  0x36   : > { %2281 = dma.hbm_to_vmem [thread:$0]  (!%p2726_p6), %s3079_s5, 4096, %s270_s13, [#allocation12], %s2640_s9, %s2640_s9, %s2641_s12  }
  0x37   : > { %s2642_s10 = smov [#allocation7]   ;;  %s2643_s18 = smov [#allocation10]  }
  0x38   : > { %s235_s17 = sshll.u32 %s2642_s10, 4  ;;  %s259_s19 = sshll.u32 %s2643_s18, 4  ;;  %s236_s17 = int_to_ptr.vmem [resolvable:$true] %s235_s17  ;;  %s260_s19 = int_to_ptr.vmem [resolvable:$true] %s259_s19 }
  0x39   : > { %s2460_s20 = scalar_lea.vmem %s236_s17, 64  ;;  %p2468_p0 = scmp.lt.s32.totalorder %s236_s17, %s236_s17 }
  0x3a   : > { %p2461_p11 = scmp.ne.s32.totalorder %s236_s17, %s2460_s20  ;;  %p2469_p2 = scmp.lt.s32.totalorder %s2460_s20, %s2460_s20 }
  0x3c   : > { %p2463_p12 = pnand %p2461_p11, %p2736_p7  ;;  %p2470_p5 = por %p2469_p2, %p2468_p0 }
  0x3e   : > { %p2464_p13 = pneg %p2463_p12 }
  0x40   : > { %p2471_p8 = pnand %p2470_p5, %p2464_p13 }
  0x42   : > { %2474 = shalt.err (!%p2471_p8)
}
  0x43   : > { %2272 = dma.hbm_to_vmem [thread:$0]  (!%p2726_p6), %s3076_s2, 64, %s236_s17, [#allocation6]  }
  0x44   : > { %s2486_s13 = scalar_lea.vmem %s260_s19, 32  ;;  %p2494_p11 = scmp.lt.s32.totalorder %s260_s19, %s260_s19 }
  0x45   : > { %p2487_p9 = scmp.ne.s32.totalorder %s260_s19, %s2486_s13  ;;  %p2495_p12 = scmp.lt.s32.totalorder %s2486_s13, %s2486_s13 }
  0x47   : > { %p2489_p10 = pnand %p2487_p9, %p2736_p7  ;;  %p2496_p1 = por %p2495_p12, %p2494_p11 }
  0x49   : > { %p2490_p4 = pneg %p2489_p10 }
  0x4b   : > { %p2497_p3 = pnand %p2496_p1, %p2490_p4 }
  0x4d   : > { %2500 = shalt.err (!%p2497_p3)
}
  0x4e   : > { %2278 = dma.hbm_to_vmem [thread:$0]  (!%p2726_p6), %s3078_s4, 32, %s260_s19, [#allocation9]  }
  0x4f   : > { %s2644_s29 = smov [#allocation13]  }
  0x50   : > { %s283_s9 = sshll.u32 %s2644_s29, 4  ;;  %s284_s9 = int_to_ptr.vmem [resolvable:$true] %s283_s9 }
  0x51   : > { %s2512_s12 = scalar_lea.vmem %s284_s9, 16  ;;  %s2519_s15 = scalar_lea.vmem %s284_s9, 32 }
  0x52   : > { %p2513_p13 = scmp.ne.s32.totalorder %s284_s9, %s2512_s12  ;;  %p2520_p5 = scmp.lt.s32.totalorder %s284_s9, %s284_s9 }
  0x53   : > { %p2521_p8 = scmp.lt.s32.totalorder %s2519_s15, %s2512_s12 }
  0x54   : > { %p2515_p0 = pnand %p2513_p13, %p2736_p7 }
  0x55   : > { %p2522_p1 = por %p2521_p8, %p2520_p5 }
  0x56   : > { %p2516_p2 = pneg %p2515_p0 }
  0x58   : > { %p2523_p3 = pnand %p2522_p1, %p2516_p2 }
  0x5a   : > { %2526 = shalt.err (!%p2523_p3)
}
  0x5b   : > { %2284 = dma.hbm_to_vmem [thread:$0]  (!%p2726_p6), %s3080_s6, 16, %s284_s9, [#allocation12]  }
  0x5c   : > { %s2137_s14 = sadd.s32 4294967294, %s2631_s27   ;;  %s2790_s11 = sadd.s32 1, %s2631_s27  }
  0x5d   : > { %s30_s17 = ssub.s32 %s2631_s27, %s2790_s11  ;;  %s33_s18 = sadd.s32 1, %s2627_s26 }
  0x5e   : > { %p31_p4 = scmp.eq.s32.totalorder %s30_s17, 0  ;;  %p40_p7 = scmp.ne.s32.totalorder %s2627_s26, %s2623_s25 }
  0x5f   : > { %p41_p9 = scmp.eq.s32.totalorder %s2631_s27, 0  ;;  %p46_p10 = scmp.ne.s32.totalorder %s2623_s25, %s2619_s24 }
  0x60   : > { %s2801_s19 = scalar_select %p31_p4, %s2627_s26, %s33_s18  }
  0x61   : > { %p2803_p11 = por %p41_p9, %p40_p7  ;;  %p3092_p12 = scmp.eq.s32.totalorder %s2712_s30, 0 }
  0x62   : > { %p196_p13 = scmp.eq.s32.totalorder %s2712_s30, 1  ;;  %p202_p0 = scmp.eq.s32.totalorder %s2137_s14, 1 }
  0x63   : > { %p2809_p6 = por %p3092_p12, %p46_p10  ;;  %p2299_p2 = scmp.lt.s32.totalorder %s2631_s27, 2 }
  0x64   : > { %s294_s22 = sand.u32 1, %s2627_s26   ;;  %p2816_p5 = por %p196_p13, %p40_p7 }
  0x65   : > { %s3093_s21 = scalar_select %p2809_p6, 1, 0 }
  0x66   : > { %s3094_s13 = scalar_select %p2816_p5, 1, 0 }
  0x67   : > { %p2820_p8 = por %p202_p0, %p46_p10  ;;  %s2146_s28 = sshll.u32 %s294_s22, 7 }
  0x68   : > { %s2166_s29 = sshll.u32 %s2631_s27, 11  ;;  %s298_s16 = scalar_lea.vmem [#allocation2], %s2146_s28 }
  0x69   : > { %s3095_s23 = scalar_select %p2820_p8, 1, 0 }
  0x6a   : > { %s2828_s15 = scalar_lea.hbm %s3074_s0, %s2166_s29  ;;  %s306_s10 = sshll.u32 %s298_s16, 4  ;;  %s2830_s10 = int_to_ptr.vmem [resolvable:$true] %s306_s10 }
  0x6b   : > { %p2834_p1 = pnand %p2299_p2, %p2803_p11  ;;  %s2838_s17 = scalar_lea.sflag [#allocation3], %s294_s22 }
  0x6c   : > { %s2527_s18 = scalar_lea.hbm %s2828_s15, 2048  ;;  %s2532_s28 = scalar_lea.hbm %s3074_s0, 4096 }
  0x6d   : > { %p2528_p3 = scmp.ne.s32.totalorder %s2828_s15, %s2527_s18  ;;  %p2529_p4 = pneg %p2834_p1 }
  0x6e   : > { %p2533_p10 = scmp.lt.s32.totalorder %s2828_s15, %s3074_s0  ;;  %p2534_p11 = scmp.lt.s32.totalorder %s2532_s28, %s2527_s18 }
  0x6f   : > { %p2530_p7 = pnand %p2529_p4, %p2528_p3 }
  0x70   : > { %p2535_p12 = por %p2534_p11, %p2533_p10 }
  0x71   : > { %p2531_p9 = pneg %p2530_p7 }
  0x73   : > { %p2536_p13 = pnand %p2535_p12, %p2531_p9 }
  0x75   : > { %2539 = shalt.err (!%p2536_p13)
}
  0x76   : > { %s2540_s20 = scalar_lea.vmem %s2830_s10, 2048  ;;  %s2645_s22 = smov [#allocation2]  }
  0x77   : > { %p2541_p0 = scmp.ne.s32.totalorder %s2830_s10, %s2540_s20  ;;  %s2545_s1 = sshll.u32 %s2645_s22, 4  ;;  %s2546_s1 = int_to_ptr.vmem [resolvable:$false] %s2545_s1 }
  0x78   : > { %s2547_s29 = scalar_lea.vmem %s2546_s1, 4096  ;;  %p2548_p7 = scmp.lt.s32.totalorder %s2830_s10, %s2546_s1 }
  0x79   : > { %p2543_p2 = pnand %p2541_p0, %p2529_p4  ;;  %p2549_p8 = scmp.lt.s32.totalorder %s2547_s29, %s2540_s20 }
  0x7b   : > { %p2544_p3 = pneg %p2543_p2  ;;  %p2550_p5 = por %p2549_p8, %p2548_p7 }
  0x7d   : > { %p2551_p6 = pnand %p2550_p5, %p2544_p3 }
  0x7f   : > { %2554 = shalt.err (!%p2551_p6)
}
  0x80   : > { %s2646_s18 = smov 1024   ;;  %s2647_s9 = smov 64  }
  0x81   : > { %2288 = dma.hbm_to_vmem [thread:$0]  (!%p2834_p1), %s2828_s15, 2048, %s2830_s10, %s2838_s17, %s2646_s18, %s2646_s18, %s2647_s9  }
  0x82   : > { %p3097_p4 = scmp.ne.s32.totalorder %s3087_s8, 0 }
  0x83   : > { %s2862_s28 = sand.u32 (!%p3097_p4), 1, %s2623_s25   ;;  %p3098_p6 = scmp.ne.s32.totalorder (!%p3097_p4), %s3093_s21, 0 }
  0x84   : > { %318 = sbr.rel (%p3097_p4) target bundleno = 1038 (0x40e), region = 48  ;;  %s2151_s1 = sshll.u32 (!%p3097_p4), %s2862_s28, 7 }
  0x85   : > { %s321_s12 = scalar_lea.sflag (!%p3097_p4), [#allocation3], %s2862_s28  ;;  %s2866_s16 = scalar_lea.vmem (!%p3097_p4), [#allocation2], %s2151_s1 }
  0x89   : > { %2598 = dma.done.wait (%p3098_p6), %s321_s12, 2048  }
  0x8a   : > { %2600 = vsyncadd (%p3098_p6), %s321_s12, 4294965248  ;;  %p3099_p5 = scmp.eq.s32.totalorder %s2712_s30, 0 }
  0x8c   : > { %2602 = dma.done.wait (%p3099_p5), [#allocation6], 65600   ;;  %p3100_p8 = pmov %p3099_p5 }
  0x8d   : > { %p3101_p1 = pmov %p3099_p5 }
  0x8e   : > { %2604 = vsyncadd (%p3100_p8), [#allocation6], 4294901696 }
  0x8f   : > { %2606 = dma.done.wait (%p3101_p1), [#allocation9], 16416   ;;  %p3102_p9 = pmov %p3101_p1 }
  0x90   : > { %p3103_p10 = pmov %p3101_p1 }
  0x91   : > { %2608 = vsyncadd (%p3102_p9), [#allocation9], 4294950880 }
  0x92   : > { %2610 = dma.done.wait (%p3103_p10), [#allocation12], 4112   ;;  %p3104_p11 = pmov %p3101_p1 }
  0x93   : > { %v458_v0 = vld [vmem:[#allocation5 + $0x1e8] sm:$0xff]  ;;  %v457_v2 = vld [vmem:[#allocation5 + $0x1e0] sm:$0xff]  ;;  %s2158_s8 = sshll.u32 %s2862_s28, 4  ;;  %s2167_s10 = sshll.u32 %s2712_s30, 8 }
  0x94   : > { %2612 = vsyncadd (%p3104_p11), [#allocation12], 4294963184  ;;  %v586_v1 = vld [vmem:[#allocation5 + $0x5e8] sm:$0xff]  ;;  %931 = vmatprep.subr.mxu0 %v458_v0  ;;  %v585_v3 = vld [vmem:[#allocation5 + $0x5e0] sm:$0xff]  ;;  %s378_s21 = scalar_lea.vmem [#allocation14], %s2158_s8  ;;  %s3031_s20 = scalar_lea.hbm %s3081_s7, %s2167_s10 }
  0x95   : > { %1008 = vmatprep.subr.mxu1 %v586_v1  ;;  %v454_v4 = vld [vmem:[#allocation5 + $0x1c8] sm:$0xff]  ;;  %932 = vmatpush1.msra.mxu0 %v457_v2  ;;  %v453_v6 = vld [vmem:[#allocation5 + $0x1c0] sm:$0xff]  ;;  %s2007_s15 = sshll.u32 %s378_s21, 4  ;;  %s1994_s22 = scalar_lea.sflag [#allocation4], %s2862_s28  ;;  %s3026_s15 = int_to_ptr.vmem [resolvable:$true] %s2007_s15 }
  0x96   : > { %v582_v5 = vld [vmem:[#allocation5 + $0x5c8] sm:$0xff]  ;;  %1009 = vmatpush1.msra.mxu1 %v585_v3  ;;  %v581_v7 = vld [vmem:[#allocation5 + $0x5c0] sm:$0xff]  ;;  %933 = vmatprep.subr.mxu0 %v454_v4  ;;  %s2555_s29 = scalar_lea.vmem %s3026_s15, 256  ;;  %p3105_p13 = scmp.ne.s32.totalorder %s3094_s13, 0 }
  0x97   : > { %v450_v8 = vld [vmem:[#allocation5 + $0x1a8] sm:$0xff]  ;;  %1010 = vmatprep.subr.mxu1 %v582_v5  ;;  %v449_v10 = vld [vmem:[#allocation5 + $0x1a0] sm:$0xff]  ;;  %934 = vmatpush1.msra.mxu0 %v453_v6  ;;  %p2556_p12 = scmp.ne.s32.totalorder %s3026_s15, %s2555_s29  ;;  %s2648_s30 = smov [#allocation14]  }
  0x98   : > { %v578_v9 = vld [vmem:[#allocation5 + $0x5a8] sm:$0xff]  ;;  %v577_v11 = vld [vmem:[#allocation5 + $0x5a0] sm:$0xff]  ;;  %1011 = vmatpush1.msra.mxu1 %v581_v7  ;;  %935 = vmatprep.subr.mxu0 %v450_v8  ;;  %s2559_s18 = sshll.u32 %s2648_s30, 4  ;;  %s2560_s18 = int_to_ptr.vmem [resolvable:$false] %s2559_s18 }
  0x99   : > { %v446_v12 = vld [vmem:[#allocation5 + $0x188] sm:$0xff]  ;;  %1012 = vmatprep.subr.mxu1 %v578_v9  ;;  %v445_v14 = vld [vmem:[#allocation5 + $0x180] sm:$0xff]  ;;  %936 = vmatpush1.msra.mxu0 %v449_v10  ;;  %p2557_p0 = pnand %p2556_p12, %p3105_p13  ;;  %s2561_s9 = scalar_lea.vmem %s2560_s18, 512 }
  0x9a   : > { %v574_v13 = vld [vmem:[#allocation5 + $0x588] sm:$0xff]  ;;  %v573_v15 = vld [vmem:[#allocation5 + $0x580] sm:$0xff]  ;;  %1013 = vmatpush1.msra.mxu1 %v577_v11  ;;  %937 = vmatprep.subr.mxu0 %v446_v12  ;;  %p2562_p3 = scmp.lt.s32.totalorder %s3026_s15, %s2560_s18  ;;  %p2563_p7 = scmp.lt.s32.totalorder %s2561_s9, %s2555_s29 }
  0x9b   : > { %v442_v16 = vld [vmem:[#allocation5 + $0x168] sm:$0xff]  ;;  %1014 = vmatprep.subr.mxu1 %v574_v13  ;;  %v441_v18 = vld [vmem:[#allocation5 + $0x160] sm:$0xff]  ;;  %938 = vmatpush1.msra.mxu0 %v445_v14  ;;  %p2558_p2 = pneg %p2557_p0 }
  0x9c   : > { %v570_v17 = vld [vmem:[#allocation5 + $0x568] sm:$0xff]  ;;  %v569_v19 = vld [vmem:[#allocation5 + $0x560] sm:$0xff]  ;;  %1015 = vmatpush1.msra.mxu1 %v573_v15  ;;  %939 = vmatprep.subr.mxu0 %v442_v16  ;;  %p2564_p4 = por %p2563_p7, %p2562_p3 }
  0x9d   : > { %v438_v20 = vld [vmem:[#allocation5 + $0x148] sm:$0xff]  ;;  %1016 = vmatprep.subr.mxu1 %v570_v17  ;;  %v437_v22 = vld [vmem:[#allocation5 + $0x140] sm:$0xff]  ;;  %940 = vmatpush1.msra.mxu0 %v441_v18 }
  0x9e   : > { %v566_v21 = vld [vmem:[#allocation5 + $0x548] sm:$0xff]  ;;  %v565_v23 = vld [vmem:[#allocation5 + $0x540] sm:$0xff]  ;;  %1017 = vmatpush1.msra.mxu1 %v569_v19  ;;  %941 = vmatprep.subr.mxu0 %v438_v20  ;;  %p2565_p6 = pnand %p2564_p4, %p2558_p2 }
  0x9f   : > { %v434_v24 = vld [vmem:[#allocation5 + $0x128] sm:$0xff]  ;;  %1018 = vmatprep.subr.mxu1 %v566_v21  ;;  %v433_v26 = vld [vmem:[#allocation5 + $0x120] sm:$0xff]  ;;  %942 = vmatpush1.msra.mxu0 %v437_v22 }
  0xa0   : > { %v562_v25 = vld [vmem:[#allocation5 + $0x528] sm:$0xff]  ;;  %v561_v27 = vld [vmem:[#allocation5 + $0x520] sm:$0xff]  ;;  %1019 = vmatpush1.msra.mxu1 %v565_v23  ;;  %943 = vmatprep.subr.mxu0 %v434_v24 }
  0xa1   : > { %v430_v28 = vld [vmem:[#allocation5 + $0x108] sm:$0xff]  ;;  %1020 = vmatprep.subr.mxu1 %v562_v25  ;;  %v429_v30 = vld [vmem:[#allocation5 + $0x100] sm:$0xff]  ;;  %944 = vmatpush1.msra.mxu0 %v433_v26 }
  0xa2   : > { %v558_v29 = vld [vmem:[#allocation5 + $0x508] sm:$0xff]  ;;  %v557_v31 = vld [vmem:[#allocation5 + $0x500] sm:$0xff]  ;;  %1021 = vmatpush1.msra.mxu1 %v561_v27  ;;  %945 = vmatprep.subr.mxu0 %v430_v28 }
  0xa3   : > { %v426_v32 = vld [vmem:[#allocation5 + $0xe8] sm:$0xff]  ;;  %1022 = vmatprep.subr.mxu1 %v558_v29  ;;  %v425_v34 = vld [vmem:[#allocation5 + $0xe0] sm:$0xff]  ;;  %946 = vmatpush1.msra.mxu0 %v429_v30 }
  0xa4   : > { %v554_v33 = vld [vmem:[#allocation5 + $0x4e8] sm:$0xff]  ;;  %v553_v35 = vld [vmem:[#allocation5 + $0x4e0] sm:$0xff]  ;;  %1023 = vmatpush1.msra.mxu1 %v557_v31  ;;  %947 = vmatprep.subr.mxu0 %v426_v32 }
  0xa5   : > { %v422_v36 = vld [vmem:[#allocation5 + $0xc8] sm:$0xff]  ;;  %1024 = vmatprep.subr.mxu1 %v554_v33  ;;  %v421_v38 = vld [vmem:[#allocation5 + $0xc0] sm:$0xff]  ;;  %948 = vmatpush1.msra.mxu0 %v425_v34 }
  0xa6   : > { %v550_v37 = vld [vmem:[#allocation5 + $0x4c8] sm:$0xff]  ;;  %v549_v39 = vld [vmem:[#allocation5 + $0x4c0] sm:$0xff]  ;;  %1025 = vmatpush1.msra.mxu1 %v553_v35  ;;  %949 = vmatprep.subr.mxu0 %v422_v36 }
  0xa7   : > { %v418_v40 = vld [vmem:[#allocation5 + $0xa8] sm:$0xff]  ;;  %1026 = vmatprep.subr.mxu1 %v550_v37  ;;  %v417_v42 = vld [vmem:[#allocation5 + $0xa0] sm:$0xff]  ;;  %950 = vmatpush1.msra.mxu0 %v421_v38 }
  0xa8   : > { %v546_v41 = vld [vmem:[#allocation5 + $0x4a8] sm:$0xff]  ;;  %v545_v43 = vld [vmem:[#allocation5 + $0x4a0] sm:$0xff]  ;;  %1027 = vmatpush1.msra.mxu1 %v549_v39  ;;  %951 = vmatprep.subr.mxu0 %v418_v40 }
  0xa9   : > { %v414_v44 = vld [vmem:[#allocation5 + $0x88] sm:$0xff]  ;;  %1028 = vmatprep.subr.mxu1 %v546_v41  ;;  %v413_v46 = vld [vmem:[#allocation5 + $0x80] sm:$0xff]  ;;  %952 = vmatpush1.msra.mxu0 %v417_v42 }
  0xaa   : > { %v542_v45 = vld [vmem:[#allocation5 + $0x488] sm:$0xff]  ;;  %v541_v47 = vld [vmem:[#allocation5 + $0x480] sm:$0xff]  ;;  %1029 = vmatpush1.msra.mxu1 %v545_v43  ;;  %953 = vmatprep.subr.mxu0 %v414_v44 }
  0xab   : > { %v410_v48 = vld [vmem:[#allocation5 + $0x68] sm:$0xff]  ;;  %1030 = vmatprep.subr.mxu1 %v542_v45  ;;  %v409_v50 = vld [vmem:[#allocation5 + $0x60] sm:$0xff]  ;;  %954 = vmatpush1.msra.mxu0 %v413_v46 }
  0xac   : > { %v538_v49 = vld [vmem:[#allocation5 + $0x468] sm:$0xff]  ;;  %v537_v51 = vld [vmem:[#allocation5 + $0x460] sm:$0xff]  ;;  %1031 = vmatpush1.msra.mxu1 %v541_v47  ;;  %955 = vmatprep.subr.mxu0 %v410_v48 }
  0xad   : > { %v406_v52 = vld [vmem:[#allocation5 + $0x48] sm:$0xff]  ;;  %1032 = vmatprep.subr.mxu1 %v538_v49  ;;  %v405_v54 = vld [vmem:[#allocation5 + $0x40] sm:$0xff]  ;;  %956 = vmatpush1.msra.mxu0 %v409_v50 }
  0xae   : > { %v534_v53 = vld [vmem:[#allocation5 + $0x448] sm:$0xff]  ;;  %v533_v55 = vld [vmem:[#allocation5 + $0x440] sm:$0xff]  ;;  %1033 = vmatpush1.msra.mxu1 %v537_v51  ;;  %957 = vmatprep.subr.mxu0 %v406_v52 }
  0xaf   : > { %v402_v56 = vld [vmem:[#allocation5 + $0x28] sm:$0xff]  ;;  %1034 = vmatprep.subr.mxu1 %v534_v53  ;;  %v401_v58 = vld [vmem:[#allocation5 + $0x20] sm:$0xff]  ;;  %958 = vmatpush1.msra.mxu0 %v405_v54 }
  0xb0   : > { %v530_v57 = vld [vmem:[#allocation5 + $0x428] sm:$0xff]  ;;  %v529_v59 = vld [vmem:[#allocation5 + $0x420] sm:$0xff]  ;;  %1035 = vmatpush1.msra.mxu1 %v533_v55  ;;  %959 = vmatprep.subr.mxu0 %v402_v56 }
  0xb1   : > { %v398_v60 = vld [vmem:[#allocation5 + $0x8] sm:$0xff]  ;;  %1036 = vmatprep.subr.mxu1 %v530_v57  ;;  %v397_v62 = vld [vmem:[#allocation5] sm:$0xff]  ;;  %960 = vmatpush1.msra.mxu0 %v401_v58 }
  0xb2   : > { %v526_v61 = vld [vmem:[#allocation5 + $0x408] sm:$0xff]  ;;  %v525_v63 = vld [vmem:[#allocation5 + $0x400] sm:$0xff]  ;;  %1037 = vmatpush1.msra.mxu1 %v529_v59  ;;  %961 = vmatprep.subr.mxu0 %v398_v60 }
  0xb3   : > { %v522_v0 = vld [vmem:[#allocation5 + $0x3e8] sm:$0xff]  ;;  %1038 = vmatprep.subr.mxu1 %v526_v61  ;;  %v521_v2 = vld [vmem:[#allocation5 + $0x3e0] sm:$0xff]  ;;  %962 = vmatpush1.msra.mxu0 %v397_v62 }
  0xb4   : > { %v650_v1 = vld [vmem:[#allocation5 + $0x7e8] sm:$0xff]  ;;  %v649_v3 = vld [vmem:[#allocation5 + $0x7e0] sm:$0xff]  ;;  %1039 = vmatpush1.msra.mxu1 %v525_v63  ;;  %963 = vmatprep.subr.mxu0 %v522_v0 }
  0xb5   : > { %v518_v4 = vld [vmem:[#allocation5 + $0x3c8] sm:$0xff]  ;;  %1040 = vmatprep.subr.mxu1 %v650_v1  ;;  %v517_v6 = vld [vmem:[#allocation5 + $0x3c0] sm:$0xff]  ;;  %964 = vmatpush2.msra.mxu0 %v521_v2  ;;  %v384_v2 = vld [vmem:[%s2866_s16 + $0x18] sm:$0xff] }
  0xb6   : > { %v646_v5 = vld [vmem:[#allocation5 + $0x7c8] sm:$0xff]  ;;  %v645_v7 = vld [vmem:[#allocation5 + $0x7c0] sm:$0xff]  ;;  %1041 = vmatpush2.msra.mxu1 %v649_v3  ;;  %965 = vmatprep.subr.mxu0 %v518_v4 }
  0xb7   : > { %v514_v8 = vld [vmem:[#allocation5 + $0x3a8] sm:$0xff]  ;;  %1042 = vmatprep.subr.mxu1 %v646_v5  ;;  %v513_v10 = vld [vmem:[#allocation5 + $0x3a0] sm:$0xff]  ;;  %966 = vmatpush2.msra.mxu0 %v517_v6  ;;  %v383_v5 = vld [vmem:[%s2866_s16 + $0x10] sm:$0xff] }
  0xb8   : > { %v642_v9 = vld [vmem:[#allocation5 + $0x7a8] sm:$0xff]  ;;  %v641_v11 = vld [vmem:[#allocation5 + $0x7a0] sm:$0xff]  ;;  %1043 = vmatpush2.msra.mxu1 %v645_v7  ;;  %967 = vmatprep.subr.mxu0 %v514_v8 }
  0xb9   : > { %v510_v12 = vld [vmem:[#allocation5 + $0x388] sm:$0xff]  ;;  %1044 = vmatprep.subr.mxu1 %v642_v9  ;;  %v509_v14 = vld [vmem:[#allocation5 + $0x380] sm:$0xff]  ;;  %968 = vmatpush2.msra.mxu0 %v513_v10 }
  0xba   : > { %v638_v13 = vld [vmem:[#allocation5 + $0x788] sm:$0xff]  ;;  %v637_v15 = vld [vmem:[#allocation5 + $0x780] sm:$0xff]  ;;  %1045 = vmatpush2.msra.mxu1 %v641_v11  ;;  %969 = vmatprep.subr.mxu0 %v510_v12 }
  0xbb   : > { %v506_v16 = vld [vmem:[#allocation5 + $0x368] sm:$0xff]  ;;  %1046 = vmatprep.subr.mxu1 %v638_v13  ;;  %v505_v18 = vld [vmem:[#allocation5 + $0x360] sm:$0xff]  ;;  %970 = vmatpush2.msra.mxu0 %v509_v14 }
  0xbc   : > { %v634_v17 = vld [vmem:[#allocation5 + $0x768] sm:$0xff]  ;;  %v633_v19 = vld [vmem:[#allocation5 + $0x760] sm:$0xff]  ;;  %1047 = vmatpush2.msra.mxu1 %v637_v15  ;;  %971 = vmatprep.subr.mxu0 %v506_v16 }
  0xbd   : > { %v502_v20 = vld [vmem:[#allocation5 + $0x348] sm:$0xff]  ;;  %1048 = vmatprep.subr.mxu1 %v634_v17  ;;  %v501_v22 = vld [vmem:[#allocation5 + $0x340] sm:$0xff]  ;;  %972 = vmatpush2.msra.mxu0 %v505_v18 }
  0xbe   : > { %v630_v21 = vld [vmem:[#allocation5 + $0x748] sm:$0xff]  ;;  %v629_v23 = vld [vmem:[#allocation5 + $0x740] sm:$0xff]  ;;  %1049 = vmatpush2.msra.mxu1 %v633_v19  ;;  %973 = vmatprep.subr.mxu0 %v502_v20 }
  0xbf   : > { %v498_v24 = vld [vmem:[#allocation5 + $0x328] sm:$0xff]  ;;  %1050 = vmatprep.subr.mxu1 %v630_v21  ;;  %v497_v26 = vld [vmem:[#allocation5 + $0x320] sm:$0xff]  ;;  %974 = vmatpush2.msra.mxu0 %v501_v22 }
  0xc0   : > { %v626_v25 = vld [vmem:[#allocation5 + $0x728] sm:$0xff]  ;;  %v625_v27 = vld [vmem:[#allocation5 + $0x720] sm:$0xff]  ;;  %1051 = vmatpush2.msra.mxu1 %v629_v23  ;;  %975 = vmatprep.subr.mxu0 %v498_v24 }
  0xc1   : > { %v494_v28 = vld [vmem:[#allocation5 + $0x308] sm:$0xff]  ;;  %1052 = vmatprep.subr.mxu1 %v626_v25  ;;  %v493_v30 = vld [vmem:[#allocation5 + $0x300] sm:$0xff]  ;;  %976 = vmatpush2.msra.mxu0 %v497_v26 }
  0xc2   : > { %v622_v29 = vld [vmem:[#allocation5 + $0x708] sm:$0xff]  ;;  %v621_v31 = vld [vmem:[#allocation5 + $0x700] sm:$0xff]  ;;  %1053 = vmatpush2.msra.mxu1 %v625_v27  ;;  %977 = vmatprep.subr.mxu0 %v494_v28 }
  0xc3   : > { %v490_v32 = vld [vmem:[#allocation5 + $0x2e8] sm:$0xff]  ;;  %1054 = vmatprep.subr.mxu1 %v622_v29  ;;  %v489_v34 = vld [vmem:[#allocation5 + $0x2e0] sm:$0xff]  ;;  %978 = vmatpush2.msra.mxu0 %v493_v30 }
  0xc4   : > { %v618_v33 = vld [vmem:[#allocation5 + $0x6e8] sm:$0xff]  ;;  %v617_v35 = vld [vmem:[#allocation5 + $0x6e0] sm:$0xff]  ;;  %1055 = vmatpush2.msra.mxu1 %v621_v31  ;;  %979 = vmatprep.subr.mxu0 %v490_v32 }
  0xc5   : > { %v486_v36 = vld [vmem:[#allocation5 + $0x2c8] sm:$0xff]  ;;  %1056 = vmatprep.subr.mxu1 %v618_v33  ;;  %v485_v38 = vld [vmem:[#allocation5 + $0x2c0] sm:$0xff]  ;;  %980 = vmatpush2.msra.mxu0 %v489_v34 }
  0xc6   : > { %v614_v37 = vld [vmem:[#allocation5 + $0x6c8] sm:$0xff]  ;;  %v613_v39 = vld [vmem:[#allocation5 + $0x6c0] sm:$0xff]  ;;  %1057 = vmatpush2.msra.mxu1 %v617_v35  ;;  %981 = vmatprep.subr.mxu0 %v486_v36 }
  0xc7   : > { %v482_v40 = vld [vmem:[#allocation5 + $0x2a8] sm:$0xff]  ;;  %1058 = vmatprep.subr.mxu1 %v614_v37  ;;  %v481_v42 = vld [vmem:[#allocation5 + $0x2a0] sm:$0xff]  ;;  %982 = vmatpush2.msra.mxu0 %v485_v38 }
  0xc8   : > { %v610_v41 = vld [vmem:[#allocation5 + $0x6a8] sm:$0xff]  ;;  %v609_v43 = vld [vmem:[#allocation5 + $0x6a0] sm:$0xff]  ;;  %1059 = vmatpush2.msra.mxu1 %v613_v39  ;;  %983 = vmatprep.subr.mxu0 %v482_v40 }
  0xc9   : > { %v478_v44 = vld [vmem:[#allocation5 + $0x288] sm:$0xff]  ;;  %1060 = vmatprep.subr.mxu1 %v610_v41  ;;  %v477_v46 = vld [vmem:[#allocation5 + $0x280] sm:$0xff]  ;;  %984 = vmatpush2.msra.mxu0 %v481_v42 }
  0xca   : > { %v606_v45 = vld [vmem:[#allocation5 + $0x688] sm:$0xff]  ;;  %v605_v47 = vld [vmem:[#allocation5 + $0x680] sm:$0xff]  ;;  %1061 = vmatpush2.msra.mxu1 %v609_v43  ;;  %985 = vmatprep.subr.mxu0 %v478_v44 }
  0xcb   : > { %v474_v48 = vld [vmem:[#allocation5 + $0x268] sm:$0xff]  ;;  %1062 = vmatprep.subr.mxu1 %v606_v45  ;;  %v473_v50 = vld [vmem:[#allocation5 + $0x260] sm:$0xff]  ;;  %986 = vmatpush2.msra.mxu0 %v477_v46 }
  0xcc   : > { %v602_v49 = vld [vmem:[#allocation5 + $0x668] sm:$0xff]  ;;  %v601_v51 = vld [vmem:[#allocation5 + $0x660] sm:$0xff]  ;;  %1063 = vmatpush2.msra.mxu1 %v605_v47  ;;  %987 = vmatprep.subr.mxu0 %v474_v48 }
  0xcd   : > { %v470_v52 = vld [vmem:[#allocation5 + $0x248] sm:$0xff]  ;;  %1064 = vmatprep.subr.mxu1 %v602_v49  ;;  %v469_v54 = vld [vmem:[#allocation5 + $0x240] sm:$0xff]  ;;  %988 = vmatpush2.msra.mxu0 %v473_v50 }
  0xce   : > { %v598_v53 = vld [vmem:[#allocation5 + $0x648] sm:$0xff]  ;;  %v597_v55 = vld [vmem:[#allocation5 + $0x640] sm:$0xff]  ;;  %1065 = vmatpush2.msra.mxu1 %v601_v51  ;;  %989 = vmatprep.subr.mxu0 %v470_v52 }
  0xcf   : > { %v466_v56 = vld [vmem:[#allocation5 + $0x228] sm:$0xff]  ;;  %1066 = vmatprep.subr.mxu1 %v598_v53  ;;  %v465_v58 = vld [vmem:[#allocation5 + $0x220] sm:$0xff]  ;;  %990 = vmatpush2.msra.mxu0 %v469_v54 }
  0xd0   : > { %v594_v57 = vld [vmem:[#allocation5 + $0x628] sm:$0xff]  ;;  %v593_v59 = vld [vmem:[#allocation5 + $0x620] sm:$0xff]  ;;  %1067 = vmatpush2.msra.mxu1 %v597_v55  ;;  %991 = vmatprep.subr.mxu0 %v466_v56 }
  0xd1   : > { %v462_v60 = vld [vmem:[#allocation5 + $0x208] sm:$0xff]  ;;  %1068 = vmatprep.subr.mxu1 %v594_v57  ;;  %v461_v62 = vld [vmem:[#allocation5 + $0x200] sm:$0xff]  ;;  %992 = vmatpush2.msra.mxu0 %v465_v58 }
  0xd2   : > { %v590_v61 = vld [vmem:[#allocation5 + $0x608] sm:$0xff]  ;;  %1069 = vmatpush2.msra.mxu1 %v593_v59  ;;  %v589_v0 = vld [vmem:[#allocation5 + $0x600] sm:$0xff]  ;;  %993 = vmatprep.subr.mxu0 %v462_v60 }
  0xd3   : > { %v382_v63 = vld [vmem:[%s2866_s16 + $0x8] sm:$0xff]  ;;  %v381_v1 = vld [vmem:[%s2866_s16] sm:$0xff]  ;;  %1070 = vmatprep.subr.mxu1 %v590_v61  ;;  %994 = vmatpush2.msra.mxu0 %v461_v62 }
  0xd4   : > { %v714_v3 = vld [vmem:[#allocation5 + $0x9e8] sm:$0xff]  ;;  %995 = vmatprep.mubr.f32.mxu0 %v382_v63  ;;  %1071 = vmatpush2.msra.mxu1 %v589_v0  ;;  %v713_v6 = vld [vmem:[#allocation5 + $0x9e0] sm:$0xff] }
  0xd5   : > { %v842_v4 = vld [vmem:[#allocation5 + $0xde8] sm:$0xff]  ;;  %996 = vmatmul.mubr.f32.vlgmr.msra.gmra.mxu0 %v381_v1  ;;  %v841_v7 = vld [vmem:[#allocation5 + $0xde0] sm:$0xff]  ;;  %1072 = vmatprep.mubr.f32.mxu1 %v384_v2 }
  0xd6   : > { %1085 = vmatprep.subr.mxu0 %v714_v3  ;;  %v710_v8 = vld [vmem:[#allocation5 + $0x9c8] sm:$0xff]  ;;  %1162 = vmatprep.subr.mxu1 %v842_v4  ;;  %v709_v10 = vld [vmem:[#allocation5 + $0x9c0] sm:$0xff] }
  0xd7   : > { %v838_v9 = vld [vmem:[#allocation5 + $0xdc8] sm:$0xff]  ;;  %1073 = vmatmul.mubr.f32.vlgmr.msra.gmra.mxu1 %v383_v5  ;;  %v837_v11 = vld [vmem:[#allocation5 + $0xdc0] sm:$0xff]  ;;  %1086 = vmatpush1.msra.mxu0 %v713_v6 }
  0xd8   : > { %1163 = vmatpush1.msra.mxu1 %v841_v7  ;;  %v706_v12 = vld [vmem:[#allocation5 + $0x9a8] sm:$0xff]  ;;  %1087 = vmatprep.subr.mxu0 %v710_v8  ;;  %v705_v14 = vld [vmem:[#allocation5 + $0x9a0] sm:$0xff] }
  0xd9   : > { %v834_v13 = vld [vmem:[#allocation5 + $0xda8] sm:$0xff]  ;;  %1164 = vmatprep.subr.mxu1 %v838_v9  ;;  %v833_v15 = vld [vmem:[#allocation5 + $0xda0] sm:$0xff]  ;;  %1088 = vmatpush1.msra.mxu0 %v709_v10 }
  0xda   : > { %1165 = vmatpush1.msra.mxu1 %v837_v11  ;;  %v702_v16 = vld [vmem:[#allocation5 + $0x988] sm:$0xff]  ;;  %1089 = vmatprep.subr.mxu0 %v706_v12  ;;  %v701_v18 = vld [vmem:[#allocation5 + $0x980] sm:$0xff] }
  0xdb   : > { %v830_v17 = vld [vmem:[#allocation5 + $0xd88] sm:$0xff]  ;;  %1166 = vmatprep.subr.mxu1 %v834_v13  ;;  %v829_v19 = vld [vmem:[#allocation5 + $0xd80] sm:$0xff]  ;;  %1090 = vmatpush1.msra.mxu0 %v705_v14 }
  0xdc   : > { %1167 = vmatpush1.msra.mxu1 %v833_v15  ;;  %v698_v20 = vld [vmem:[#allocation5 + $0x968] sm:$0xff]  ;;  %1091 = vmatprep.subr.mxu0 %v702_v16  ;;  %v697_v22 = vld [vmem:[#allocation5 + $0x960] sm:$0xff] }
  0xdd   : > { %v826_v21 = vld [vmem:[#allocation5 + $0xd68] sm:$0xff]  ;;  %1168 = vmatprep.subr.mxu1 %v830_v17  ;;  %v825_v23 = vld [vmem:[#allocation5 + $0xd60] sm:$0xff]  ;;  %1092 = vmatpush1.msra.mxu0 %v701_v18 }
  0xde   : > { %1169 = vmatpush1.msra.mxu1 %v829_v19  ;;  %v694_v24 = vld [vmem:[#allocation5 + $0x948] sm:$0xff]  ;;  %1093 = vmatprep.subr.mxu0 %v698_v20  ;;  %v693_v26 = vld [vmem:[#allocation5 + $0x940] sm:$0xff] }
  0xdf   : > { %v822_v25 = vld [vmem:[#allocation5 + $0xd48] sm:$0xff]  ;;  %1170 = vmatprep.subr.mxu1 %v826_v21  ;;  %v821_v27 = vld [vmem:[#allocation5 + $0xd40] sm:$0xff]  ;;  %1094 = vmatpush1.msra.mxu0 %v697_v22 }
  0xe0   : > { %1171 = vmatpush1.msra.mxu1 %v825_v23  ;;  %v690_v28 = vld [vmem:[#allocation5 + $0x928] sm:$0xff]  ;;  %1095 = vmatprep.subr.mxu0 %v694_v24  ;;  %v689_v30 = vld [vmem:[#allocation5 + $0x920] sm:$0xff] }
  0xe1   : > { %v818_v29 = vld [vmem:[#allocation5 + $0xd28] sm:$0xff]  ;;  %1172 = vmatprep.subr.mxu1 %v822_v25  ;;  %v817_v31 = vld [vmem:[#allocation5 + $0xd20] sm:$0xff]  ;;  %1096 = vmatpush1.msra.mxu0 %v693_v26 }
  0xe2   : > { %1173 = vmatpush1.msra.mxu1 %v821_v27  ;;  %v686_v32 = vld [vmem:[#allocation5 + $0x908] sm:$0xff]  ;;  %1097 = vmatprep.subr.mxu0 %v690_v28  ;;  %v685_v34 = vld [vmem:[#allocation5 + $0x900] sm:$0xff] }
  0xe3   : > { %v814_v33 = vld [vmem:[#allocation5 + $0xd08] sm:$0xff]  ;;  %1174 = vmatprep.subr.mxu1 %v818_v29  ;;  %v813_v35 = vld [vmem:[#allocation5 + $0xd00] sm:$0xff]  ;;  %1098 = vmatpush1.msra.mxu0 %v689_v30 }
  0xe4   : > { %1175 = vmatpush1.msra.mxu1 %v817_v31  ;;  %v682_v36 = vld [vmem:[#allocation5 + $0x8e8] sm:$0xff]  ;;  %1099 = vmatprep.subr.mxu0 %v686_v32  ;;  %v681_v38 = vld [vmem:[#allocation5 + $0x8e0] sm:$0xff] }
  0xe5   : > { %v810_v37 = vld [vmem:[#allocation5 + $0xce8] sm:$0xff]  ;;  %1176 = vmatprep.subr.mxu1 %v814_v33  ;;  %v809_v39 = vld [vmem:[#allocation5 + $0xce0] sm:$0xff]  ;;  %1100 = vmatpush1.msra.mxu0 %v685_v34 }
  0xe6   : > { %1177 = vmatpush1.msra.mxu1 %v813_v35  ;;  %v678_v40 = vld [vmem:[#allocation5 + $0x8c8] sm:$0xff]  ;;  %1101 = vmatprep.subr.mxu0 %v682_v36  ;;  %v677_v42 = vld [vmem:[#allocation5 + $0x8c0] sm:$0xff] }
  0xe7   : > { %v806_v41 = vld [vmem:[#allocation5 + $0xcc8] sm:$0xff]  ;;  %1178 = vmatprep.subr.mxu1 %v810_v37  ;;  %v805_v43 = vld [vmem:[#allocation5 + $0xcc0] sm:$0xff]  ;;  %1102 = vmatpush1.msra.mxu0 %v681_v38 }
  0xe8   : > { %1179 = vmatpush1.msra.mxu1 %v809_v39  ;;  %v674_v44 = vld [vmem:[#allocation5 + $0x8a8] sm:$0xff]  ;;  %1103 = vmatprep.subr.mxu0 %v678_v40  ;;  %v673_v46 = vld [vmem:[#allocation5 + $0x8a0] sm:$0xff] }
  0xe9   : > { %v802_v45 = vld [vmem:[#allocation5 + $0xca8] sm:$0xff]  ;;  %1180 = vmatprep.subr.mxu1 %v806_v41  ;;  %v801_v47 = vld [vmem:[#allocation5 + $0xca0] sm:$0xff]  ;;  %1104 = vmatpush1.msra.mxu0 %v677_v42 }
  0xea   : > { %1181 = vmatpush1.msra.mxu1 %v805_v43  ;;  %v670_v48 = vld [vmem:[#allocation5 + $0x888] sm:$0xff]  ;;  %1105 = vmatprep.subr.mxu0 %v674_v44  ;;  %v669_v50 = vld [vmem:[#allocation5 + $0x880] sm:$0xff] }
  0xeb   : > { %v798_v49 = vld [vmem:[#allocation5 + $0xc88] sm:$0xff]  ;;  %1182 = vmatprep.subr.mxu1 %v802_v45  ;;  %v797_v51 = vld [vmem:[#allocation5 + $0xc80] sm:$0xff]  ;;  %1106 = vmatpush1.msra.mxu0 %v673_v46 }
  0xec   : > { %1183 = vmatpush1.msra.mxu1 %v801_v47  ;;  %v666_v52 = vld [vmem:[#allocation5 + $0x868] sm:$0xff]  ;;  %1107 = vmatprep.subr.mxu0 %v670_v48  ;;  %v665_v54 = vld [vmem:[#allocation5 + $0x860] sm:$0xff] }
  0xed   : > { %v794_v53 = vld [vmem:[#allocation5 + $0xc68] sm:$0xff]  ;;  %1184 = vmatprep.subr.mxu1 %v798_v49  ;;  %v793_v55 = vld [vmem:[#allocation5 + $0xc60] sm:$0xff]  ;;  %1108 = vmatpush1.msra.mxu0 %v669_v50 }
  0xee   : > { %1185 = vmatpush1.msra.mxu1 %v797_v51  ;;  %v662_v56 = vld [vmem:[#allocation5 + $0x848] sm:$0xff]  ;;  %1109 = vmatprep.subr.mxu0 %v666_v52  ;;  %v661_v58 = vld [vmem:[#allocation5 + $0x840] sm:$0xff] }
  0xef   : > { %v790_v57 = vld [vmem:[#allocation5 + $0xc48] sm:$0xff]  ;;  %1186 = vmatprep.subr.mxu1 %v794_v53  ;;  %v789_v59 = vld [vmem:[#allocation5 + $0xc40] sm:$0xff]  ;;  %1110 = vmatpush1.msra.mxu0 %v665_v54 }
  0xf0   : > { %1187 = vmatpush1.msra.mxu1 %v793_v55  ;;  %v658_v60 = vld [vmem:[#allocation5 + $0x828] sm:$0xff]  ;;  %1111 = vmatprep.subr.mxu0 %v662_v56  ;;  %v657_v62 = vld [vmem:[#allocation5 + $0x820] sm:$0xff] }
  0xf1   : > { %v786_v61 = vld [vmem:[#allocation5 + $0xc28] sm:$0xff]  ;;  %1188 = vmatprep.subr.mxu1 %v790_v57  ;;  %v785_v63 = vld [vmem:[#allocation5 + $0xc20] sm:$0xff]  ;;  %1112 = vmatpush1.msra.mxu0 %v661_v58 }
  0xf2   : > { %1189 = vmatpush1.msra.mxu1 %v789_v59  ;;  %v654_v0 = vld [vmem:[#allocation5 + $0x808] sm:$0xff]  ;;  %1113 = vmatprep.subr.mxu0 %v658_v60  ;;  %v653_v2 = vld [vmem:[#allocation5 + $0x800] sm:$0xff] }
  0xf3   : > { %v782_v1 = vld [vmem:[#allocation5 + $0xc08] sm:$0xff]  ;;  %1190 = vmatprep.subr.mxu1 %v786_v61  ;;  %v781_v3 = vld [vmem:[#allocation5 + $0xc00] sm:$0xff]  ;;  %1114 = vmatpush1.msra.mxu0 %v657_v62  ;;  %v392_v62 = vld [vmem:[%s2866_s16 + $0x58] sm:$0xff] }
  0xf4   : > { %1191 = vmatpush1.msra.mxu1 %v785_v63  ;;  %v778_v4 = vld [vmem:[#allocation5 + $0xbe8] sm:$0xff]  ;;  %1115 = vmatprep.subr.mxu0 %v654_v0  ;;  %v777_v6 = vld [vmem:[#allocation5 + $0xbe0] sm:$0xff] }
  0xf5   : > { %v906_v5 = vld [vmem:[#allocation5 + $0xfe8] sm:$0xff]  ;;  %1192 = vmatprep.subr.mxu1 %v782_v1  ;;  %v905_v7 = vld [vmem:[#allocation5 + $0xfe0] sm:$0xff]  ;;  %1116 = vmatpush1.msra.mxu0 %v653_v2  ;;  %v391_v1 = vld [vmem:[%s2866_s16 + $0x50] sm:$0xff] }
  0xf6   : > { %1193 = vmatpush1.msra.mxu1 %v781_v3  ;;  %v774_v8 = vld [vmem:[#allocation5 + $0xbc8] sm:$0xff]  ;;  %1117 = vmatprep.subr.mxu0 %v778_v4  ;;  %v773_v10 = vld [vmem:[#allocation5 + $0xbc0] sm:$0xff] }
  0xf7   : > { %v902_v9 = vld [vmem:[#allocation5 + $0xfc8] sm:$0xff]  ;;  %1194 = vmatprep.subr.mxu1 %v906_v5  ;;  %v901_v11 = vld [vmem:[#allocation5 + $0xfc0] sm:$0xff]  ;;  %1118 = vmatpush2.msra.mxu0 %v777_v6 }
  0xf8   : > { %1195 = vmatpush2.msra.mxu1 %v905_v7  ;;  %v770_v12 = vld [vmem:[#allocation5 + $0xba8] sm:$0xff]  ;;  %1119 = vmatprep.subr.mxu0 %v774_v8  ;;  %v769_v14 = vld [vmem:[#allocation5 + $0xba0] sm:$0xff] }
  0xf9   : > { %v898_v13 = vld [vmem:[#allocation5 + $0xfa8] sm:$0xff]  ;;  %1196 = vmatprep.subr.mxu1 %v902_v9  ;;  %v897_v15 = vld [vmem:[#allocation5 + $0xfa0] sm:$0xff]  ;;  %1120 = vmatpush2.msra.mxu0 %v773_v10  ;;  %v388_v10 = vld [vmem:[%s2866_s16 + $0x38] sm:$0xff] }
  0xfa   : > { %1197 = vmatpush2.msra.mxu1 %v901_v11  ;;  %v766_v16 = vld [vmem:[#allocation5 + $0xb88] sm:$0xff]  ;;  %1121 = vmatprep.subr.mxu0 %v770_v12  ;;  %v765_v18 = vld [vmem:[#allocation5 + $0xb80] sm:$0xff]  ;;  %v460_v11 = vld [vmem:[#allocation5 + $0x1f8] sm:$0xff] }
  0xfb   : > { %v894_v17 = vld [vmem:[#allocation5 + $0xf88] sm:$0xff]  ;;  %1198 = vmatprep.subr.mxu1 %v898_v13  ;;  %v893_v19 = vld [vmem:[#allocation5 + $0xf80] sm:$0xff]  ;;  %1122 = vmatpush2.msra.mxu0 %v769_v14  ;;  %v588_v12 = vld [vmem:[#allocation5 + $0x5f8] sm:$0xff] }
  0xfc   : > { %1199 = vmatpush2.msra.mxu1 %v897_v15  ;;  %v762_v20 = vld [vmem:[#allocation5 + $0xb68] sm:$0xff]  ;;  %1123 = vmatprep.subr.mxu0 %v766_v16  ;;  %v761_v22 = vld [vmem:[#allocation5 + $0xb60] sm:$0xff]  ;;  %v387_v13 = vld [vmem:[%s2866_s16 + $0x30] sm:$0xff] }
  0xfd   : > { %v890_v21 = vld [vmem:[#allocation5 + $0xf68] sm:$0xff]  ;;  %1200 = vmatprep.subr.mxu1 %v894_v17  ;;  %v889_v23 = vld [vmem:[#allocation5 + $0xf60] sm:$0xff]  ;;  %1124 = vmatpush2.msra.mxu0 %v765_v18  ;;  %v459_v14 = vld [vmem:[#allocation5 + $0x1f0] sm:$0xff] }
  0xfe   : > { %1201 = vmatpush2.msra.mxu1 %v893_v19  ;;  %v758_v24 = vld [vmem:[#allocation5 + $0xb48] sm:$0xff]  ;;  %1125 = vmatprep.subr.mxu0 %v762_v20  ;;  %v757_v26 = vld [vmem:[#allocation5 + $0xb40] sm:$0xff]  ;;  %v587_v15 = vld [vmem:[#allocation5 + $0x5f0] sm:$0xff] }
  0xff   : > { %v886_v25 = vld [vmem:[#allocation5 + $0xf48] sm:$0xff]  ;;  %1202 = vmatprep.subr.mxu1 %v890_v21  ;;  %v885_v27 = vld [vmem:[#allocation5 + $0xf40] sm:$0xff]  ;;  %1126 = vmatpush2.msra.mxu0 %v761_v22  ;;  %v456_v16 = vld [vmem:[#allocation5 + $0x1d8] sm:$0xff] }
 0x100   : > { %1203 = vmatpush2.msra.mxu1 %v889_v23  ;;  %v754_v28 = vld [vmem:[#allocation5 + $0xb28] sm:$0xff]  ;;  %1127 = vmatprep.subr.mxu0 %v758_v24  ;;  %v753_v30 = vld [vmem:[#allocation5 + $0xb20] sm:$0xff]  ;;  %v584_v17 = vld [vmem:[#allocation5 + $0x5d8] sm:$0xff] }
 0x101   : > { %v882_v29 = vld [vmem:[#allocation5 + $0xf28] sm:$0xff]  ;;  %1204 = vmatprep.subr.mxu1 %v886_v25  ;;  %v881_v31 = vld [vmem:[#allocation5 + $0xf20] sm:$0xff]  ;;  %1128 = vmatpush2.msra.mxu0 %v757_v26  ;;  %v455_v19 = vld [vmem:[#allocation5 + $0x1d0] sm:$0xff] }
 0x102   : > { %1205 = vmatpush2.msra.mxu1 %v885_v27  ;;  %v750_v32 = vld [vmem:[#allocation5 + $0xb08] sm:$0xff]  ;;  %1129 = vmatprep.subr.mxu0 %v754_v28  ;;  %v749_v34 = vld [vmem:[#allocation5 + $0xb00] sm:$0xff]  ;;  %v583_v20 = vld [vmem:[#allocation5 + $0x5d0] sm:$0xff] }
 0x103   : > { %v878_v33 = vld [vmem:[#allocation5 + $0xf08] sm:$0xff]  ;;  %1206 = vmatprep.subr.mxu1 %v882_v29  ;;  %v877_v35 = vld [vmem:[#allocation5 + $0xf00] sm:$0xff]  ;;  %1130 = vmatpush2.msra.mxu0 %v753_v30  ;;  %v452_v22 = vld [vmem:[#allocation5 + $0x1b8] sm:$0xff] }
 0x104   : > { %1207 = vmatpush2.msra.mxu1 %v881_v31  ;;  %v746_v36 = vld [vmem:[#allocation5 + $0xae8] sm:$0xff]  ;;  %1131 = vmatprep.subr.mxu0 %v750_v32  ;;  %v745_v38 = vld [vmem:[#allocation5 + $0xae0] sm:$0xff]  ;;  %v580_v23 = vld [vmem:[#allocation5 + $0x5b8] sm:$0xff] }
 0x105   : > { %v874_v37 = vld [vmem:[#allocation5 + $0xee8] sm:$0xff]  ;;  %1208 = vmatprep.subr.mxu1 %v878_v33  ;;  %v873_v39 = vld [vmem:[#allocation5 + $0xee0] sm:$0xff]  ;;  %1132 = vmatpush2.msra.mxu0 %v749_v34  ;;  %v396_v24 = vld [vmem:[%s2866_s16 + $0x78] sm:$0xff] }
 0x106   : > { %1209 = vmatpush2.msra.mxu1 %v877_v35  ;;  %v742_v40 = vld [vmem:[#allocation5 + $0xac8] sm:$0xff]  ;;  %1133 = vmatprep.subr.mxu0 %v746_v36  ;;  %v741_v42 = vld [vmem:[#allocation5 + $0xac0] sm:$0xff]  ;;  %v451_v25 = vld [vmem:[#allocation5 + $0x1b0] sm:$0xff] }
 0x107   : > { %v870_v41 = vld [vmem:[#allocation5 + $0xec8] sm:$0xff]  ;;  %1210 = vmatprep.subr.mxu1 %v874_v37  ;;  %v869_v43 = vld [vmem:[#allocation5 + $0xec0] sm:$0xff]  ;;  %1134 = vmatpush2.msra.mxu0 %v745_v38  ;;  %v579_v26 = vld [vmem:[#allocation5 + $0x5b0] sm:$0xff] }
 0x108   : > { %1211 = vmatpush2.msra.mxu1 %v873_v39  ;;  %v738_v44 = vld [vmem:[#allocation5 + $0xaa8] sm:$0xff]  ;;  %1135 = vmatprep.subr.mxu0 %v742_v40  ;;  %v737_v46 = vld [vmem:[#allocation5 + $0xaa0] sm:$0xff]  ;;  %v448_v27 = vld [vmem:[#allocation5 + $0x198] sm:$0xff] }
 0x109   : > { %v866_v45 = vld [vmem:[#allocation5 + $0xea8] sm:$0xff]  ;;  %1212 = vmatprep.subr.mxu1 %v870_v41  ;;  %v865_v47 = vld [vmem:[#allocation5 + $0xea0] sm:$0xff]  ;;  %1136 = vmatpush2.msra.mxu0 %v741_v42  ;;  %v395_v28 = vld [vmem:[%s2866_s16 + $0x70] sm:$0xff] }
 0x10a   : > { %1213 = vmatpush2.msra.mxu1 %v869_v43  ;;  %v734_v48 = vld [vmem:[#allocation5 + $0xa88] sm:$0xff]  ;;  %1137 = vmatprep.subr.mxu0 %v738_v44  ;;  %v733_v50 = vld [vmem:[#allocation5 + $0xa80] sm:$0xff]  ;;  %v576_v29 = vld [vmem:[#allocation5 + $0x598] sm:$0xff] }
 0x10b   : > { %v862_v49 = vld [vmem:[#allocation5 + $0xe88] sm:$0xff]  ;;  %1214 = vmatprep.subr.mxu1 %v866_v45  ;;  %v861_v51 = vld [vmem:[#allocation5 + $0xe80] sm:$0xff]  ;;  %1138 = vmatpush2.msra.mxu0 %v737_v46  ;;  %v447_v30 = vld [vmem:[#allocation5 + $0x190] sm:$0xff] }
 0x10c   : > { %1215 = vmatpush2.msra.mxu1 %v865_v47  ;;  %v730_v52 = vld [vmem:[#allocation5 + $0xa68] sm:$0xff]  ;;  %1139 = vmatprep.subr.mxu0 %v734_v48  ;;  %v729_v54 = vld [vmem:[#allocation5 + $0xa60] sm:$0xff]  ;;  %v575_v31 = vld [vmem:[#allocation5 + $0x590] sm:$0xff] }
 0x10d   : > { %v858_v53 = vld [vmem:[#allocation5 + $0xe68] sm:$0xff]  ;;  %1216 = vmatprep.subr.mxu1 %v862_v49  ;;  %v857_v55 = vld [vmem:[#allocation5 + $0xe60] sm:$0xff]  ;;  %1140 = vmatpush2.msra.mxu0 %v733_v50  ;;  %v444_v32 = vld [vmem:[#allocation5 + $0x178] sm:$0xff] }
 0x10e   : > { %1217 = vmatpush2.msra.mxu1 %v861_v51  ;;  %v390_v56 = vld [vmem:[%s2866_s16 + $0x48] sm:$0xff]  ;;  %1141 = vmatprep.subr.mxu0 %v730_v52  ;;  %v389_v59 = vld [vmem:[%s2866_s16 + $0x40] sm:$0xff]  ;;  %v572_v33 = vld [vmem:[#allocation5 + $0x578] sm:$0xff] }
 0x10f   : > { %v726_v57 = vld [vmem:[#allocation5 + $0xa48] sm:$0xff]  ;;  %1218 = vmatprep.subr.mxu1 %v858_v53  ;;  %1142 = vmatpush2.msra.mxu0 %v729_v54  ;;  %v725_v60 = vld [vmem:[#allocation5 + $0xa40] sm:$0xff]  ;;  %v443_v34 = vld [vmem:[#allocation5 + $0x170] sm:$0xff] }
 0x110   : > { %v854_v58 = vld [vmem:[#allocation5 + $0xe48] sm:$0xff]  ;;  %1219 = vmatpush2.msra.mxu1 %v857_v55  ;;  %v853_v61 = vld [vmem:[#allocation5 + $0xe40] sm:$0xff]  ;;  %1001 = vmatprep.mubr.f32.mxu0 %v390_v56  ;;  %v571_v35 = vld [vmem:[#allocation5 + $0x570] sm:$0xff] }
 0x111   : > { %1143 = vmatprep.subr.mxu0 %v726_v57  ;;  %v722_v63 = vld [vmem:[#allocation5 + $0xa28] sm:$0xff]  ;;  %1220 = vmatprep.subr.mxu1 %v854_v58  ;;  %v721_v2 = vld [vmem:[#allocation5 + $0xa20] sm:$0xff]  ;;  %v440_v36 = vld [vmem:[#allocation5 + $0x158] sm:$0xff] }
 0x112   : > { %1002 = vmatmul.mubr.f32.gmra.mxu0 %v389_v59  ;;  %v850_v0 = vld [vmem:[#allocation5 + $0xe28] sm:$0xff]  ;;  %1221 = vmatpush2.msra.mxu1 %v853_v61  ;;  %v849_v3 = vld [vmem:[#allocation5 + $0xe20] sm:$0xff]  ;;  %v568_v37 = vld [vmem:[#allocation5 + $0x558] sm:$0xff] }
 0x113   : > { %1144 = vmatpush2.msra.mxu0 %v725_v60  ;;  %1078 = vmatprep.mubr.f32.mxu1 %v392_v62  ;;  %v718_v4 = vld [vmem:[#allocation5 + $0xa08] sm:$0xff]  ;;  %v717_v6 = vld [vmem:[#allocation5 + $0xa00] sm:$0xff]  ;;  %v439_v38 = vld [vmem:[#allocation5 + $0x150] sm:$0xff] }
 0x114   : > { %1145 = vmatprep.subr.mxu0 %v722_v63  ;;  %v846_v5 = vld [vmem:[#allocation5 + $0xe08] sm:$0xff]  ;;  %1222 = vmatprep.subr.mxu1 %v850_v0  ;;  %v845_v8 = vld [vmem:[#allocation5 + $0xe00] sm:$0xff]  ;;  %v567_v39 = vld [vmem:[#allocation5 + $0x550] sm:$0xff] }
 0x115   : > { %1079 = vmatmul.mubr.f32.gmra.mxu1 %v391_v1  ;;  %v386_v7 = vld [vmem:[%s2866_s16 + $0x28] sm:$0xff]  ;;  %1146 = vmatpush2.msra.mxu0 %v721_v2  ;;  %v385_v9 = vld [vmem:[%s2866_s16 + $0x20] sm:$0xff]  ;;  %v436_v40 = vld [vmem:[#allocation5 + $0x138] sm:$0xff] }
 0x116   : > { %1223 = vmatpush2.msra.mxu1 %v849_v3  ;;  %1147 = vmatprep.subr.mxu0 %v718_v4  ;;  %v394_v18 = vld [vmem:[%s2866_s16 + $0x68] sm:$0xff]  ;;  %v393_v21 = vld [vmem:[%s2866_s16 + $0x60] sm:$0xff]  ;;  %v564_v41 = vld [vmem:[#allocation5 + $0x538] sm:$0xff] }
 0x117   : > { %1224 = vmatprep.subr.mxu1 %v846_v5  ;;  %1148 = vmatpush2.msra.mxu0 %v717_v6  ;;  %v435_v42 = vld [vmem:[#allocation5 + $0x130] sm:$0xff]  ;;  %v432_v44 = vld [vmem:[#allocation5 + $0x118] sm:$0xff] }
 0x118   : > { %1149 = vmatprep.mubr.f32.mxu0 %v386_v7  ;;  %1225 = vmatpush2.msra.mxu1 %v845_v8  ;;  %v563_v43 = vld [vmem:[#allocation5 + $0x530] sm:$0xff]  ;;  %v560_v45 = vld [vmem:[#allocation5 + $0x518] sm:$0xff] }
 0x119   : > { %1150 = vmatmul.mubr.f32.vlgmr.msra.gmra.mxu0 %v385_v9  ;;  %1226 = vmatprep.mubr.f32.mxu1 %v388_v10  ;;  %v431_v46 = vld [vmem:[#allocation5 + $0x110] sm:$0xff]  ;;  %v428_v48 = vld [vmem:[#allocation5 + $0xf8] sm:$0xff] }
 0x11a   : > { %1239 = vmatprep.subr.mxu0 %v460_v11  ;;  %1316 = vmatprep.subr.mxu1 %v588_v12  ;;  %v559_v47 = vld [vmem:[#allocation5 + $0x510] sm:$0xff]  ;;  %v556_v49 = vld [vmem:[#allocation5 + $0x4f8] sm:$0xff] }
 0x11b   : > { %1227 = vmatmul.mubr.f32.vlgmr.msra.gmra.mxu1 %v387_v13  ;;  %1240 = vmatpush1.msra.mxu0 %v459_v14  ;;  %v427_v50 = vld [vmem:[#allocation5 + $0xf0] sm:$0xff]  ;;  %v424_v52 = vld [vmem:[#allocation5 + $0xd8] sm:$0xff] }
 0x11c   : > { %1317 = vmatpush1.msra.mxu1 %v587_v15  ;;  %1241 = vmatprep.subr.mxu0 %v456_v16  ;;  %v555_v51 = vld [vmem:[#allocation5 + $0x4f0] sm:$0xff]  ;;  %v552_v53 = vld [vmem:[#allocation5 + $0x4d8] sm:$0xff] }
 0x11d   : > { %1318 = vmatprep.subr.mxu1 %v584_v17  ;;  %1155 = vmatprep.mubr.f32.mxu0 %v394_v18  ;;  %v423_v54 = vld [vmem:[#allocation5 + $0xd0] sm:$0xff]  ;;  %v420_v56 = vld [vmem:[#allocation5 + $0xb8] sm:$0xff] }
 0x11e   : > { %1242 = vmatpush1.msra.mxu0 %v455_v19  ;;  %1319 = vmatpush1.msra.mxu1 %v583_v20  ;;  %v551_v55 = vld [vmem:[#allocation5 + $0x4d0] sm:$0xff]  ;;  %v548_v57 = vld [vmem:[#allocation5 + $0x4b8] sm:$0xff] }
 0x11f   : > { %1156 = vmatmul.mubr.f32.gmra.mxu0 %v393_v21  ;;  %1243 = vmatprep.subr.mxu0 %v452_v22  ;;  %v419_v58 = vld [vmem:[#allocation5 + $0xb0] sm:$0xff]  ;;  %v416_v60 = vld [vmem:[#allocation5 + $0x98] sm:$0xff] }
 0x120   : > { %1320 = vmatprep.subr.mxu1 %v580_v23  ;;  %1232 = vmatprep.mubr.f32.mxu1 %v396_v24  ;;  %v547_v59 = vld [vmem:[#allocation5 + $0x4b0] sm:$0xff]  ;;  %v544_v61 = vld [vmem:[#allocation5 + $0x498] sm:$0xff] }
 0x121   : > { %1244 = vmatpush1.msra.mxu0 %v451_v25  ;;  %1321 = vmatpush1.msra.mxu1 %v579_v26  ;;  %v415_v62 = vld [vmem:[#allocation5 + $0x90] sm:$0xff]  ;;  %v412_v0 = vld [vmem:[#allocation5 + $0x78] sm:$0xff] }
 0x122   : > { %1245 = vmatprep.subr.mxu0 %v448_v27  ;;  %1233 = vmatmul.mubr.f32.gmra.mxu1 %v395_v28  ;;  %v543_v63 = vld [vmem:[#allocation5 + $0x490] sm:$0xff]  ;;  %v540_v1 = vld [vmem:[#allocation5 + $0x478] sm:$0xff] }
 0x123   : > { %1322 = vmatprep.subr.mxu1 %v576_v29  ;;  %1246 = vmatpush1.msra.mxu0 %v447_v30  ;;  %v411_v2 = vld [vmem:[#allocation5 + $0x70] sm:$0xff]  ;;  %v408_v4 = vld [vmem:[#allocation5 + $0x58] sm:$0xff] }
 0x124   : > { %1323 = vmatpush1.msra.mxu1 %v575_v31  ;;  %1247 = vmatprep.subr.mxu0 %v444_v32  ;;  %v539_v3 = vld [vmem:[#allocation5 + $0x470] sm:$0xff]  ;;  %v536_v5 = vld [vmem:[#allocation5 + $0x458] sm:$0xff] }
 0x125   : > { %1324 = vmatprep.subr.mxu1 %v572_v33  ;;  %1248 = vmatpush1.msra.mxu0 %v443_v34  ;;  %v407_v6 = vld [vmem:[#allocation5 + $0x50] sm:$0xff]  ;;  %v404_v8 = vld [vmem:[#allocation5 + $0x38] sm:$0xff] }
 0x126   : > { %1325 = vmatpush1.msra.mxu1 %v571_v35  ;;  %1249 = vmatprep.subr.mxu0 %v440_v36  ;;  %v535_v7 = vld [vmem:[#allocation5 + $0x450] sm:$0xff]  ;;  %v532_v9 = vld [vmem:[#allocation5 + $0x438] sm:$0xff] }
 0x127   : > { %1326 = vmatprep.subr.mxu1 %v568_v37  ;;  %1250 = vmatpush1.msra.mxu0 %v439_v38  ;;  %v403_v10 = vld [vmem:[#allocation5 + $0x30] sm:$0xff]  ;;  %v400_v12 = vld [vmem:[#allocation5 + $0x18] sm:$0xff] }
 0x128   : > { %1327 = vmatpush1.msra.mxu1 %v567_v39  ;;  %1251 = vmatprep.subr.mxu0 %v436_v40  ;;  %v531_v11 = vld [vmem:[#allocation5 + $0x430] sm:$0xff]  ;;  %v528_v13 = vld [vmem:[#allocation5 + $0x418] sm:$0xff] }
 0x129   : > { %1328 = vmatprep.subr.mxu1 %v564_v41  ;;  %1252 = vmatpush1.msra.mxu0 %v435_v42  ;;  %v399_v14 = vld [vmem:[#allocation5 + $0x10] sm:$0xff]  ;;  %v524_v16 = vld [vmem:[#allocation5 + $0x3f8] sm:$0xff] }
 0x12a   : > { %1329 = vmatpush1.msra.mxu1 %v563_v43  ;;  %1253 = vmatprep.subr.mxu0 %v432_v44  ;;  %v527_v15 = vld [vmem:[#allocation5 + $0x410] sm:$0xff]  ;;  %v652_v17 = vld [vmem:[#allocation5 + $0x7f8] sm:$0xff] }
 0x12b   : > { %1330 = vmatprep.subr.mxu1 %v560_v45  ;;  %1254 = vmatpush1.msra.mxu0 %v431_v46  ;;  %v523_v18 = vld [vmem:[#allocation5 + $0x3f0] sm:$0xff]  ;;  %v520_v20 = vld [vmem:[#allocation5 + $0x3d8] sm:$0xff] }
 0x12c   : > { %1331 = vmatpush1.msra.mxu1 %v559_v47  ;;  %1255 = vmatprep.subr.mxu0 %v428_v48  ;;  %v651_v19 = vld [vmem:[#allocation5 + $0x7f0] sm:$0xff]  ;;  %v648_v21 = vld [vmem:[#allocation5 + $0x7d8] sm:$0xff] }
 0x12d   : > { %1332 = vmatprep.subr.mxu1 %v556_v49  ;;  %1256 = vmatpush1.msra.mxu0 %v427_v50  ;;  %v519_v22 = vld [vmem:[#allocation5 + $0x3d0] sm:$0xff]  ;;  %v516_v24 = vld [vmem:[#allocation5 + $0x3b8] sm:$0xff] }
 0x12e   : > { %1333 = vmatpush1.msra.mxu1 %v555_v51  ;;  %1257 = vmatprep.subr.mxu0 %v424_v52  ;;  %v647_v23 = vld [vmem:[#allocation5 + $0x7d0] sm:$0xff]  ;;  %v644_v25 = vld [vmem:[#allocation5 + $0x7b8] sm:$0xff] }
 0x12f   : > { %1334 = vmatprep.subr.mxu1 %v552_v53  ;;  %1258 = vmatpush1.msra.mxu0 %v423_v54  ;;  %v515_v26 = vld [vmem:[#allocation5 + $0x3b0] sm:$0xff]  ;;  %v512_v28 = vld [vmem:[#allocation5 + $0x398] sm:$0xff] }
 0x130   : > { %1335 = vmatpush1.msra.mxu1 %v551_v55  ;;  %1259 = vmatprep.subr.mxu0 %v420_v56  ;;  %v643_v27 = vld [vmem:[#allocation5 + $0x7b0] sm:$0xff]  ;;  %v640_v29 = vld [vmem:[#allocation5 + $0x798] sm:$0xff] }
 0x131   : > { %1336 = vmatprep.subr.mxu1 %v548_v57  ;;  %1260 = vmatpush1.msra.mxu0 %v419_v58  ;;  %v511_v30 = vld [vmem:[#allocation5 + $0x390] sm:$0xff]  ;;  %v508_v32 = vld [vmem:[#allocation5 + $0x378] sm:$0xff] }
 0x132   : > { %1337 = vmatpush1.msra.mxu1 %v547_v59  ;;  %1261 = vmatprep.subr.mxu0 %v416_v60  ;;  %v639_v31 = vld [vmem:[#allocation5 + $0x790] sm:$0xff]  ;;  %v636_v33 = vld [vmem:[#allocation5 + $0x778] sm:$0xff] }
 0x133   : > { %1338 = vmatprep.subr.mxu1 %v544_v61  ;;  %1262 = vmatpush1.msra.mxu0 %v415_v62  ;;  %v507_v34 = vld [vmem:[#allocation5 + $0x370] sm:$0xff]  ;;  %v504_v36 = vld [vmem:[#allocation5 + $0x358] sm:$0xff] }
 0x134   : > { %1339 = vmatpush1.msra.mxu1 %v543_v63  ;;  %1263 = vmatprep.subr.mxu0 %v412_v0  ;;  %v635_v35 = vld [vmem:[#allocation5 + $0x770] sm:$0xff]  ;;  %v632_v37 = vld [vmem:[#allocation5 + $0x758] sm:$0xff] }
 0x135   : > { %1340 = vmatprep.subr.mxu1 %v540_v1  ;;  %1264 = vmatpush1.msra.mxu0 %v411_v2  ;;  %v503_v38 = vld [vmem:[#allocation5 + $0x350] sm:$0xff]  ;;  %v500_v40 = vld [vmem:[#allocation5 + $0x338] sm:$0xff] }
 0x136   : > { %1341 = vmatpush1.msra.mxu1 %v539_v3  ;;  %1265 = vmatprep.subr.mxu0 %v408_v4  ;;  %v631_v39 = vld [vmem:[#allocation5 + $0x750] sm:$0xff]  ;;  %v628_v41 = vld [vmem:[#allocation5 + $0x738] sm:$0xff] }
 0x137   : > { %1342 = vmatprep.subr.mxu1 %v536_v5  ;;  %1266 = vmatpush1.msra.mxu0 %v407_v6  ;;  %v499_v42 = vld [vmem:[#allocation5 + $0x330] sm:$0xff]  ;;  %v496_v44 = vld [vmem:[#allocation5 + $0x318] sm:$0xff] }
 0x138   : > { %1343 = vmatpush1.msra.mxu1 %v535_v7  ;;  %1267 = vmatprep.subr.mxu0 %v404_v8  ;;  %v627_v43 = vld [vmem:[#allocation5 + $0x730] sm:$0xff]  ;;  %v624_v45 = vld [vmem:[#allocation5 + $0x718] sm:$0xff] }
 0x139   : > { %1344 = vmatprep.subr.mxu1 %v532_v9  ;;  %1268 = vmatpush1.msra.mxu0 %v403_v10  ;;  %v495_v46 = vld [vmem:[#allocation5 + $0x310] sm:$0xff]  ;;  %v492_v48 = vld [vmem:[#allocation5 + $0x2f8] sm:$0xff] }
 0x13a   : > { %1345 = vmatpush1.msra.mxu1 %v531_v11  ;;  %1269 = vmatprep.subr.mxu0 %v400_v12  ;;  %v623_v47 = vld [vmem:[#allocation5 + $0x710] sm:$0xff]  ;;  %v620_v49 = vld [vmem:[#allocation5 + $0x6f8] sm:$0xff] }
 0x13b   : > { %1346 = vmatprep.subr.mxu1 %v528_v13  ;;  %1270 = vmatpush1.msra.mxu0 %v399_v14  ;;  %v491_v50 = vld [vmem:[#allocation5 + $0x2f0] sm:$0xff]  ;;  %v488_v52 = vld [vmem:[#allocation5 + $0x2d8] sm:$0xff] }
 0x13c   : > { %1347 = vmatpush1.msra.mxu1 %v527_v15  ;;  %1271 = vmatprep.subr.mxu0 %v524_v16  ;;  %v619_v51 = vld [vmem:[#allocation5 + $0x6f0] sm:$0xff]  ;;  %v616_v53 = vld [vmem:[#allocation5 + $0x6d8] sm:$0xff] }
 0x13d   : > { %1348 = vmatprep.subr.mxu1 %v652_v17  ;;  %1272 = vmatpush2.msra.mxu0 %v523_v18  ;;  %v487_v54 = vld [vmem:[#allocation5 + $0x2d0] sm:$0xff]  ;;  %v484_v56 = vld [vmem:[#allocation5 + $0x2b8] sm:$0xff]  ;;  %v2355_v17 = vld [vmem:[%s2866_s16 + $0x8] sm:$0xff] }
 0x13e   : > { %1349 = vmatpush2.msra.mxu1 %v651_v19  ;;  %1273 = vmatprep.subr.mxu0 %v520_v20  ;;  %v615_v55 = vld [vmem:[#allocation5 + $0x6d0] sm:$0xff]  ;;  %v612_v57 = vld [vmem:[#allocation5 + $0x6b8] sm:$0xff]  ;;  %v2356_v19 = vld [vmem:[%s2866_s16] sm:$0xff] }
 0x13f   : > { %1350 = vmatprep.subr.mxu1 %v648_v21  ;;  %1274 = vmatpush2.msra.mxu0 %v519_v22  ;;  %v483_v58 = vld [vmem:[#allocation5 + $0x2b0] sm:$0xff]  ;;  %v480_v60 = vld [vmem:[#allocation5 + $0x298] sm:$0xff] }
 0x140   : > { %1351 = vmatpush2.msra.mxu1 %v647_v23  ;;  %1275 = vmatprep.subr.mxu0 %v516_v24  ;;  %v611_v59 = vld [vmem:[#allocation5 + $0x6b0] sm:$0xff]  ;;  %v608_v61 = vld [vmem:[#allocation5 + $0x698] sm:$0xff] }
 0x141   : > { %1352 = vmatprep.subr.mxu1 %v644_v25  ;;  %1276 = vmatpush2.msra.mxu0 %v515_v26  ;;  %v479_v62 = vld [vmem:[#allocation5 + $0x290] sm:$0xff]  ;;  %v476_v0 = vld [vmem:[#allocation5 + $0x278] sm:$0xff] }
 0x142   : > { %1353 = vmatpush2.msra.mxu1 %v643_v27  ;;  %1277 = vmatprep.subr.mxu0 %v512_v28  ;;  %v607_v63 = vld [vmem:[#allocation5 + $0x690] sm:$0xff]  ;;  %v604_v1 = vld [vmem:[#allocation5 + $0x678] sm:$0xff] }
 0x143   : > { %1354 = vmatprep.subr.mxu1 %v640_v29  ;;  %1278 = vmatpush2.msra.mxu0 %v511_v30  ;;  %v475_v2 = vld [vmem:[#allocation5 + $0x270] sm:$0xff]  ;;  %v472_v4 = vld [vmem:[#allocation5 + $0x258] sm:$0xff] }
 0x144   : > { %1355 = vmatpush2.msra.mxu1 %v639_v31  ;;  %1279 = vmatprep.subr.mxu0 %v508_v32  ;;  %v603_v3 = vld [vmem:[#allocation5 + $0x670] sm:$0xff]  ;;  %v600_v5 = vld [vmem:[#allocation5 + $0x658] sm:$0xff] }
 0x145   : > { %1356 = vmatprep.subr.mxu1 %v636_v33  ;;  %1280 = vmatpush2.msra.mxu0 %v507_v34  ;;  %v471_v6 = vld [vmem:[#allocation5 + $0x250] sm:$0xff]  ;;  %v468_v8 = vld [vmem:[#allocation5 + $0x238] sm:$0xff] }
 0x146   : > { %1357 = vmatpush2.msra.mxu1 %v635_v35  ;;  %1281 = vmatprep.subr.mxu0 %v504_v36  ;;  %v599_v7 = vld [vmem:[#allocation5 + $0x650] sm:$0xff]  ;;  %v596_v9 = vld [vmem:[#allocation5 + $0x638] sm:$0xff] }
 0x147   : > { %1358 = vmatprep.subr.mxu1 %v632_v37  ;;  %1282 = vmatpush2.msra.mxu0 %v503_v38  ;;  %v467_v10 = vld [vmem:[#allocation5 + $0x230] sm:$0xff]  ;;  %v464_v12 = vld [vmem:[#allocation5 + $0x218] sm:$0xff] }
 0x148   : > { %1359 = vmatpush2.msra.mxu1 %v631_v39  ;;  %1283 = vmatprep.subr.mxu0 %v500_v40  ;;  %v595_v11 = vld [vmem:[#allocation5 + $0x630] sm:$0xff]  ;;  %v592_v13 = vld [vmem:[#allocation5 + $0x618] sm:$0xff] }
 0x149   : > { %1360 = vmatprep.subr.mxu1 %v628_v41  ;;  %1284 = vmatpush2.msra.mxu0 %v499_v42  ;;  %v463_v14 = vld [vmem:[#allocation5 + $0x210] sm:$0xff]  ;;  %v716_v16 = vld [vmem:[#allocation5 + $0x9f8] sm:$0xff] }
 0x14a   : > { %1361 = vmatpush2.msra.mxu1 %v627_v43  ;;  %1285 = vmatprep.subr.mxu0 %v496_v44  ;;  %v591_v15 = vld [vmem:[#allocation5 + $0x610] sm:$0xff]  ;;  %v844_v18 = vld [vmem:[#allocation5 + $0xdf8] sm:$0xff] }
 0x14b   : > { %1362 = vmatprep.subr.mxu1 %v624_v45  ;;  %1286 = vmatpush2.msra.mxu0 %v495_v46  ;;  %v715_v20 = vld [vmem:[#allocation5 + $0x9f0] sm:$0xff]  ;;  %v2357_v22 = vld [vmem:[%s2866_s16 + $0x18] sm:$0xff] }
 0x14c   : > { %1363 = vmatpush2.msra.mxu1 %v623_v47  ;;  %1287 = vmatprep.subr.mxu0 %v492_v48  ;;  %v843_v21 = vld [vmem:[#allocation5 + $0xdf0] sm:$0xff]  ;;  %v712_v23 = vld [vmem:[#allocation5 + $0x9d8] sm:$0xff] }
 0x14d   : > { %1364 = vmatprep.subr.mxu1 %v620_v49  ;;  %1288 = vmatpush2.msra.mxu0 %v491_v50  ;;  %v840_v24 = vld [vmem:[#allocation5 + $0xdd8] sm:$0xff]  ;;  %v2358_v25 = vld [vmem:[%s2866_s16 + $0x10] sm:$0xff] }
 0x14e   : > { %1365 = vmatpush2.msra.mxu1 %v619_v51  ;;  %1289 = vmatprep.subr.mxu0 %v488_v52  ;;  %v711_v26 = vld [vmem:[#allocation5 + $0x9d0] sm:$0xff]  ;;  %v708_v28 = vld [vmem:[#allocation5 + $0x9b8] sm:$0xff] }
 0x14f   : > { %1366 = vmatprep.subr.mxu1 %v616_v53  ;;  %1290 = vmatpush2.msra.mxu0 %v487_v54  ;;  %v839_v27 = vld [vmem:[#allocation5 + $0xdd0] sm:$0xff]  ;;  %v836_v29 = vld [vmem:[#allocation5 + $0xdb8] sm:$0xff] }
 0x150   : > { %1367 = vmatpush2.msra.mxu1 %v615_v55  ;;  %1291 = vmatprep.subr.mxu0 %v484_v56  ;;  %v707_v30 = vld [vmem:[#allocation5 + $0x9b0] sm:$0xff]  ;;  %v704_v32 = vld [vmem:[#allocation5 + $0x998] sm:$0xff] }
 0x151   : > { %1368 = vmatprep.subr.mxu1 %v612_v57  ;;  %1292 = vmatpush2.msra.mxu0 %v483_v58  ;;  %v835_v31 = vld [vmem:[#allocation5 + $0xdb0] sm:$0xff]  ;;  %v832_v33 = vld [vmem:[#allocation5 + $0xd98] sm:$0xff] }
 0x152   : > { %1369 = vmatpush2.msra.mxu1 %v611_v59  ;;  %1293 = vmatprep.subr.mxu0 %v480_v60  ;;  %v703_v34 = vld [vmem:[#allocation5 + $0x990] sm:$0xff]  ;;  %v700_v36 = vld [vmem:[#allocation5 + $0x978] sm:$0xff] }
 0x153   : > { %1370 = vmatprep.subr.mxu1 %v608_v61  ;;  %1294 = vmatpush2.msra.mxu0 %v479_v62  ;;  %v831_v35 = vld [vmem:[#allocation5 + $0xd90] sm:$0xff]  ;;  %v828_v37 = vld [vmem:[#allocation5 + $0xd78] sm:$0xff] }
 0x154   : > { %1371 = vmatpush2.msra.mxu1 %v607_v63  ;;  %1295 = vmatprep.subr.mxu0 %v476_v0  ;;  %v699_v38 = vld [vmem:[#allocation5 + $0x970] sm:$0xff]  ;;  %v696_v40 = vld [vmem:[#allocation5 + $0x958] sm:$0xff] }
 0x155   : > { %1372 = vmatprep.subr.mxu1 %v604_v1  ;;  %1296 = vmatpush2.msra.mxu0 %v475_v2  ;;  %v827_v39 = vld [vmem:[#allocation5 + $0xd70] sm:$0xff]  ;;  %v824_v41 = vld [vmem:[#allocation5 + $0xd58] sm:$0xff] }
 0x156   : > { %1373 = vmatpush2.msra.mxu1 %v603_v3  ;;  %1297 = vmatprep.subr.mxu0 %v472_v4  ;;  %v695_v42 = vld [vmem:[#allocation5 + $0x950] sm:$0xff]  ;;  %v692_v44 = vld [vmem:[#allocation5 + $0x938] sm:$0xff] }
 0x157   : > { %1374 = vmatprep.subr.mxu1 %v600_v5  ;;  %1298 = vmatpush2.msra.mxu0 %v471_v6  ;;  %v823_v43 = vld [vmem:[#allocation5 + $0xd50] sm:$0xff]  ;;  %v820_v45 = vld [vmem:[#allocation5 + $0xd38] sm:$0xff] }
 0x158   : > { %1375 = vmatpush2.msra.mxu1 %v599_v7  ;;  %1299 = vmatprep.subr.mxu0 %v468_v8  ;;  %v691_v46 = vld [vmem:[#allocation5 + $0x930] sm:$0xff]  ;;  %v688_v48 = vld [vmem:[#allocation5 + $0x918] sm:$0xff] }
 0x159   : > { %1376 = vmatprep.subr.mxu1 %v596_v9  ;;  %1300 = vmatpush2.msra.mxu0 %v467_v10  ;;  %v819_v47 = vld [vmem:[#allocation5 + $0xd30] sm:$0xff]  ;;  %v816_v49 = vld [vmem:[#allocation5 + $0xd18] sm:$0xff] }
 0x15a   : > { %1377 = vmatpush2.msra.mxu1 %v595_v11  ;;  %1301 = vmatprep.subr.mxu0 %v464_v12  ;;  %v687_v50 = vld [vmem:[#allocation5 + $0x910] sm:$0xff]  ;;  %v684_v52 = vld [vmem:[#allocation5 + $0x8f8] sm:$0xff] }
 0x15b   : > { %1378 = vmatprep.subr.mxu1 %v592_v13  ;;  %1302 = vmatpush2.msra.mxu0 %v463_v14  ;;  %v815_v51 = vld [vmem:[#allocation5 + $0xd10] sm:$0xff]  ;;  %v812_v53 = vld [vmem:[#allocation5 + $0xcf8] sm:$0xff] }
 0x15c   : > { %1303 = vmatprep.mubr.f32.mxu0 %v2355_v17  ;;  %1379 = vmatpush2.msra.mxu1 %v591_v15  ;;  %v683_v54 = vld [vmem:[#allocation5 + $0x8f0] sm:$0xff]  ;;  %v680_v56 = vld [vmem:[#allocation5 + $0x8d8] sm:$0xff] }
 0x15d   : > { %1304 = vmatmul.mubr.f32.vlgmr.msra.gmra.mxu0 %v2356_v19  ;;  %1380 = vmatprep.mubr.f32.mxu1 %v2357_v22  ;;  %v811_v55 = vld [vmem:[#allocation5 + $0xcf0] sm:$0xff]  ;;  %v808_v57 = vld [vmem:[#allocation5 + $0xcd8] sm:$0xff] }
 0x15e   : > { %1393 = vmatprep.subr.mxu0 %v716_v16  ;;  %1470 = vmatprep.subr.mxu1 %v844_v18  ;;  %v679_v58 = vld [vmem:[#allocation5 + $0x8d0] sm:$0xff]  ;;  %v676_v60 = vld [vmem:[#allocation5 + $0x8b8] sm:$0xff] }
 0x15f   : > { %1381 = vmatmul.mubr.f32.vlgmr.msra.gmra.mxu1 %v2358_v25  ;;  %1394 = vmatpush1.msra.mxu0 %v715_v20  ;;  %v807_v59 = vld [vmem:[#allocation5 + $0xcd0] sm:$0xff]  ;;  %v804_v61 = vld [vmem:[#allocation5 + $0xcb8] sm:$0xff] }
 0x160   : > { %1471 = vmatpush1.msra.mxu1 %v843_v21  ;;  %1395 = vmatprep.subr.mxu0 %v712_v23  ;;  %v675_v62 = vld [vmem:[#allocation5 + $0x8b0] sm:$0xff]  ;;  %v672_v0 = vld [vmem:[#allocation5 + $0x898] sm:$0xff] }
 0x161   : > { %1472 = vmatprep.subr.mxu1 %v840_v24  ;;  %1396 = vmatpush1.msra.mxu0 %v711_v26  ;;  %v803_v63 = vld [vmem:[#allocation5 + $0xcb0] sm:$0xff]  ;;  %v800_v1 = vld [vmem:[#allocation5 + $0xc98] sm:$0xff] }
 0x162   : > { %1473 = vmatpush1.msra.mxu1 %v839_v27  ;;  %1397 = vmatprep.subr.mxu0 %v708_v28  ;;  %v671_v2 = vld [vmem:[#allocation5 + $0x890] sm:$0xff]  ;;  %v668_v4 = vld [vmem:[#allocation5 + $0x878] sm:$0xff] }
 0x163   : > { %1474 = vmatprep.subr.mxu1 %v836_v29  ;;  %1398 = vmatpush1.msra.mxu0 %v707_v30  ;;  %v799_v3 = vld [vmem:[#allocation5 + $0xc90] sm:$0xff]  ;;  %v796_v5 = vld [vmem:[#allocation5 + $0xc78] sm:$0xff] }
 0x164   : > { %1475 = vmatpush1.msra.mxu1 %v835_v31  ;;  %1399 = vmatprep.subr.mxu0 %v704_v32  ;;  %v667_v6 = vld [vmem:[#allocation5 + $0x870] sm:$0xff]  ;;  %v664_v8 = vld [vmem:[#allocation5 + $0x858] sm:$0xff] }
 0x165   : > { %1476 = vmatprep.subr.mxu1 %v832_v33  ;;  %1400 = vmatpush1.msra.mxu0 %v703_v34  ;;  %v795_v7 = vld [vmem:[#allocation5 + $0xc70] sm:$0xff]  ;;  %v792_v9 = vld [vmem:[#allocation5 + $0xc58] sm:$0xff] }
 0x166   : > { %1477 = vmatpush1.msra.mxu1 %v831_v35  ;;  %1401 = vmatprep.subr.mxu0 %v700_v36  ;;  %v663_v10 = vld [vmem:[#allocation5 + $0x850] sm:$0xff]  ;;  %v660_v12 = vld [vmem:[#allocation5 + $0x838] sm:$0xff] }
 0x167   : > { %1478 = vmatprep.subr.mxu1 %v828_v37  ;;  %1402 = vmatpush1.msra.mxu0 %v699_v38  ;;  %v791_v11 = vld [vmem:[#allocation5 + $0xc50] sm:$0xff]  ;;  %v788_v13 = vld [vmem:[#allocation5 + $0xc38] sm:$0xff] }
 0x168   : > { %1479 = vmatpush1.msra.mxu1 %v827_v39  ;;  %1403 = vmatprep.subr.mxu0 %v696_v40  ;;  %v659_v14 = vld [vmem:[#allocation5 + $0x830] sm:$0xff]  ;;  %v656_v16 = vld [vmem:[#allocation5 + $0x818] sm:$0xff] }
 0x169   : > { %1480 = vmatprep.subr.mxu1 %v824_v41  ;;  %1404 = vmatpush1.msra.mxu0 %v695_v42  ;;  %v787_v15 = vld [vmem:[#allocation5 + $0xc30] sm:$0xff]  ;;  %v784_v17 = vld [vmem:[#allocation5 + $0xc18] sm:$0xff] }
 0x16a   : > { %1481 = vmatpush1.msra.mxu1 %v823_v43  ;;  %1405 = vmatprep.subr.mxu0 %v692_v44  ;;  %v655_v18 = vld [vmem:[#allocation5 + $0x810] sm:$0xff]  ;;  %v780_v20 = vld [vmem:[#allocation5 + $0xbf8] sm:$0xff] }
 0x16b   : > { %1482 = vmatprep.subr.mxu1 %v820_v45  ;;  %1406 = vmatpush1.msra.mxu0 %v691_v46  ;;  %v783_v19 = vld [vmem:[#allocation5 + $0xc10] sm:$0xff]  ;;  %v908_v21 = vld [vmem:[#allocation5 + $0xff8] sm:$0xff] }
 0x16c   : > { %1483 = vmatpush1.msra.mxu1 %v819_v47  ;;  %1407 = vmatprep.subr.mxu0 %v688_v48  ;;  %v779_v22 = vld [vmem:[#allocation5 + $0xbf0] sm:$0xff]  ;;  %v776_v24 = vld [vmem:[#allocation5 + $0xbd8] sm:$0xff] }
 0x16d   : > { %1484 = vmatprep.subr.mxu1 %v816_v49  ;;  %1408 = vmatpush1.msra.mxu0 %v687_v50  ;;  %v907_v23 = vld [vmem:[#allocation5 + $0xff0] sm:$0xff]  ;;  %v904_v25 = vld [vmem:[#allocation5 + $0xfd8] sm:$0xff] }
 0x16e   : > { %1485 = vmatpush1.msra.mxu1 %v815_v51  ;;  %1409 = vmatprep.subr.mxu0 %v684_v52  ;;  %v775_v26 = vld [vmem:[#allocation5 + $0xbd0] sm:$0xff]  ;;  %v772_v28 = vld [vmem:[#allocation5 + $0xbb8] sm:$0xff] }
 0x16f   : > { %1486 = vmatprep.subr.mxu1 %v812_v53  ;;  %1410 = vmatpush1.msra.mxu0 %v683_v54  ;;  %v903_v27 = vld [vmem:[#allocation5 + $0xfd0] sm:$0xff]  ;;  %v900_v29 = vld [vmem:[#allocation5 + $0xfb8] sm:$0xff] }
 0x170   : > { %1487 = vmatpush1.msra.mxu1 %v811_v55  ;;  %1411 = vmatprep.subr.mxu0 %v680_v56  ;;  %v771_v30 = vld [vmem:[#allocation5 + $0xbb0] sm:$0xff]  ;;  %v768_v32 = vld [vmem:[#allocation5 + $0xb98] sm:$0xff] }
 0x171   : > { %1488 = vmatprep.subr.mxu1 %v808_v57  ;;  %1412 = vmatpush1.msra.mxu0 %v679_v58  ;;  %v899_v31 = vld [vmem:[#allocation5 + $0xfb0] sm:$0xff]  ;;  %v896_v33 = vld [vmem:[#allocation5 + $0xf98] sm:$0xff] }
 0x172   : > { %1489 = vmatpush1.msra.mxu1 %v807_v59  ;;  %1413 = vmatprep.subr.mxu0 %v676_v60  ;;  %v767_v34 = vld [vmem:[#allocation5 + $0xb90] sm:$0xff]  ;;  %v764_v36 = vld [vmem:[#allocation5 + $0xb78] sm:$0xff] }
 0x173   : > { %1490 = vmatprep.subr.mxu1 %v804_v61  ;;  %1414 = vmatpush1.msra.mxu0 %v675_v62  ;;  %v895_v35 = vld [vmem:[#allocation5 + $0xf90] sm:$0xff]  ;;  %v892_v37 = vld [vmem:[#allocation5 + $0xf78] sm:$0xff] }
 0x174   : > { %1491 = vmatpush1.msra.mxu1 %v803_v63  ;;  %1415 = vmatprep.subr.mxu0 %v672_v0  ;;  %v763_v38 = vld [vmem:[#allocation5 + $0xb70] sm:$0xff]  ;;  %v760_v40 = vld [vmem:[#allocation5 + $0xb58] sm:$0xff] }
 0x175   : > { %1492 = vmatprep.subr.mxu1 %v800_v1  ;;  %1416 = vmatpush1.msra.mxu0 %v671_v2  ;;  %v891_v39 = vld [vmem:[#allocation5 + $0xf70] sm:$0xff]  ;;  %v888_v41 = vld [vmem:[#allocation5 + $0xf58] sm:$0xff] }
 0x176   : > { %1493 = vmatpush1.msra.mxu1 %v799_v3  ;;  %1417 = vmatprep.subr.mxu0 %v668_v4  ;;  %v759_v42 = vld [vmem:[#allocation5 + $0xb50] sm:$0xff]  ;;  %v756_v44 = vld [vmem:[#allocation5 + $0xb38] sm:$0xff] }
 0x177   : > { %1494 = vmatprep.subr.mxu1 %v796_v5  ;;  %1418 = vmatpush1.msra.mxu0 %v667_v6  ;;  %v887_v43 = vld [vmem:[#allocation5 + $0xf50] sm:$0xff]  ;;  %v884_v45 = vld [vmem:[#allocation5 + $0xf38] sm:$0xff] }
 0x178   : > { %1495 = vmatpush1.msra.mxu1 %v795_v7  ;;  %1419 = vmatprep.subr.mxu0 %v664_v8  ;;  %v755_v46 = vld [vmem:[#allocation5 + $0xb30] sm:$0xff]  ;;  %v752_v48 = vld [vmem:[#allocation5 + $0xb18] sm:$0xff] }
 0x179   : > { %1496 = vmatprep.subr.mxu1 %v792_v9  ;;  %1420 = vmatpush1.msra.mxu0 %v663_v10  ;;  %v883_v47 = vld [vmem:[#allocation5 + $0xf30] sm:$0xff]  ;;  %v880_v49 = vld [vmem:[#allocation5 + $0xf18] sm:$0xff]  ;;  %v2359_v10 = vld [vmem:[%s2866_s16 + $0x48] sm:$0xff] }
 0x17a   : > { %1497 = vmatpush1.msra.mxu1 %v791_v11  ;;  %1421 = vmatprep.subr.mxu0 %v660_v12  ;;  %v751_v50 = vld [vmem:[#allocation5 + $0xb10] sm:$0xff]  ;;  %v748_v52 = vld [vmem:[#allocation5 + $0xaf8] sm:$0xff]  ;;  %v2360_v12 = vld [vmem:[%s2866_s16 + $0x40] sm:$0xff] }
 0x17b   : > { %1498 = vmatprep.subr.mxu1 %v788_v13  ;;  %1422 = vmatpush1.msra.mxu0 %v659_v14  ;;  %v879_v51 = vld [vmem:[#allocation5 + $0xf10] sm:$0xff]  ;;  %v876_v53 = vld [vmem:[#allocation5 + $0xef8] sm:$0xff] }
 0x17c   : > { %1499 = vmatpush1.msra.mxu1 %v787_v15  ;;  %1423 = vmatprep.subr.mxu0 %v656_v16  ;;  %v747_v54 = vld [vmem:[#allocation5 + $0xaf0] sm:$0xff]  ;;  %v744_v56 = vld [vmem:[#allocation5 + $0xad8] sm:$0xff] }
 0x17d   : > { %1500 = vmatprep.subr.mxu1 %v784_v17  ;;  %1424 = vmatpush1.msra.mxu0 %v655_v18  ;;  %v875_v55 = vld [vmem:[#allocation5 + $0xef0] sm:$0xff]  ;;  %v872_v57 = vld [vmem:[#allocation5 + $0xed8] sm:$0xff] }
 0x17e   : > { %1501 = vmatpush1.msra.mxu1 %v783_v19  ;;  %1425 = vmatprep.subr.mxu0 %v780_v20  ;;  %v743_v58 = vld [vmem:[#allocation5 + $0xad0] sm:$0xff]  ;;  %v740_v60 = vld [vmem:[#allocation5 + $0xab8] sm:$0xff] }
 0x17f   : > { %1502 = vmatprep.subr.mxu1 %v908_v21  ;;  %1426 = vmatpush2.msra.mxu0 %v779_v22  ;;  %v871_v59 = vld [vmem:[#allocation5 + $0xed0] sm:$0xff]  ;;  %v868_v61 = vld [vmem:[#allocation5 + $0xeb8] sm:$0xff] }
 0x180   : > { %1503 = vmatpush2.msra.mxu1 %v907_v23  ;;  %1427 = vmatprep.subr.mxu0 %v776_v24  ;;  %v739_v62 = vld [vmem:[#allocation5 + $0xab0] sm:$0xff]  ;;  %v736_v0 = vld [vmem:[#allocation5 + $0xa98] sm:$0xff]  ;;  %v2363_v24 = vld [vmem:[%s2866_s16 + $0x28] sm:$0xff] }
 0x181   : > { %1504 = vmatprep.subr.mxu1 %v904_v25  ;;  %1428 = vmatpush2.msra.mxu0 %v775_v26  ;;  %v867_v63 = vld [vmem:[#allocation5 + $0xeb0] sm:$0xff]  ;;  %v864_v1 = vld [vmem:[#allocation5 + $0xe98] sm:$0xff] }
 0x182   : > { %1505 = vmatpush2.msra.mxu1 %v903_v27  ;;  %1429 = vmatprep.subr.mxu0 %v772_v28  ;;  %v735_v2 = vld [vmem:[#allocation5 + $0xa90] sm:$0xff]  ;;  %v732_v4 = vld [vmem:[#allocation5 + $0xa78] sm:$0xff]  ;;  %v2365_v27 = vld [vmem:[%s2866_s16 + $0x20] sm:$0xff] }
 0x183   : > { %1506 = vmatprep.subr.mxu1 %v900_v29  ;;  %1430 = vmatpush2.msra.mxu0 %v771_v30  ;;  %v863_v3 = vld [vmem:[#allocation5 + $0xe90] sm:$0xff]  ;;  %v860_v5 = vld [vmem:[#allocation5 + $0xe78] sm:$0xff] }
 0x184   : > { %1507 = vmatpush2.msra.mxu1 %v899_v31  ;;  %1431 = vmatprep.subr.mxu0 %v768_v32  ;;  %v731_v6 = vld [vmem:[#allocation5 + $0xa70] sm:$0xff]  ;;  %v728_v8 = vld [vmem:[#allocation5 + $0xa58] sm:$0xff]  ;;  %v2367_v32 = vld [vmem:[%s2866_s16 + $0x68] sm:$0xff] }
 0x185   : > { %1508 = vmatprep.subr.mxu1 %v896_v33  ;;  %1432 = vmatpush2.msra.mxu0 %v767_v34  ;;  %v859_v7 = vld [vmem:[#allocation5 + $0xe70] sm:$0xff]  ;;  %v856_v9 = vld [vmem:[#allocation5 + $0xe58] sm:$0xff] }
 0x186   : > { %1509 = vmatpush2.msra.mxu1 %v895_v35  ;;  %1433 = vmatprep.subr.mxu0 %v764_v36  ;;  %v727_v11 = vld [vmem:[#allocation5 + $0xa50] sm:$0xff]  ;;  %v724_v14 = vld [vmem:[#allocation5 + $0xa38] sm:$0xff]  ;;  %v1599_v36 = vld [vmem:[#allocation8 + $0xe0] sm:$0xff] }
 0x187   : > { %1510 = vmatprep.subr.mxu1 %v892_v37  ;;  %1434 = vmatpush2.msra.mxu0 %v763_v38  ;;  %v855_v13 = vld [vmem:[#allocation5 + $0xe50] sm:$0xff]  ;;  %v852_v15 = vld [vmem:[#allocation5 + $0xe38] sm:$0xff]  ;;  %v1663_v37 = vld [vmem:[#allocation8 + $0x2e0] sm:$0xff] }
 0x188   : > { %1511 = vmatpush2.msra.mxu1 %v891_v39  ;;  %1435 = vmatprep.subr.mxu0 %v760_v40  ;;  %v2361_v16 = vld [vmem:[%s2866_s16 + $0x58] sm:$0xff]  ;;  %v723_v17 = vld [vmem:[#allocation5 + $0xa30] sm:$0xff]  ;;  %v2369_v38 = vld [vmem:[%s2866_s16 + $0x60] sm:$0xff] }
 0x189   : > { %1512 = vmatprep.subr.mxu1 %v888_v41  ;;  %1436 = vmatpush2.msra.mxu0 %v759_v42  ;;  %v851_v18 = vld [vmem:[#allocation5 + $0xe30] sm:$0xff]  ;;  %v720_v19 = vld [vmem:[#allocation5 + $0xa18] sm:$0xff] }
 0x18a   : > { %1513 = vmatpush2.msra.mxu1 %v887_v43  ;;  %1437 = vmatprep.subr.mxu0 %v756_v44  ;;  %v848_v20 = vld [vmem:[#allocation5 + $0xe18] sm:$0xff]  ;;  %v2362_v21 = vld [vmem:[%s2866_s16 + $0x50] sm:$0xff] }
 0x18b   : > { %1514 = vmatprep.subr.mxu1 %v884_v45  ;;  %1438 = vmatpush2.msra.mxu0 %v755_v46  ;;  %v719_v22 = vld [vmem:[#allocation5 + $0xa10] sm:$0xff]  ;;  %v2364_v25 = vld [vmem:[%s2866_s16 + $0x38] sm:$0xff]  ;;  %v1595_v46 = vld [vmem:[#allocation8 + $0xc0] sm:$0xff] }
 0x18c   : > { %1515 = vmatpush2.msra.mxu1 %v883_v47  ;;  %1439 = vmatprep.subr.mxu0 %v752_v48  ;;  %v847_v23 = vld [vmem:[#allocation5 + $0xe10] sm:$0xff]  ;;  %v1602_v26 = vld [vmem:[#allocation8 + $0xf8] sm:$0xff]  ;;  %v1659_v47 = vld [vmem:[#allocation8 + $0x2c0] sm:$0xff] }
 0x18d   : > { %1516 = vmatprep.subr.mxu1 %v880_v49  ;;  %1440 = vmatpush2.msra.mxu0 %v751_v50  ;;  %v2366_v28 = vld [vmem:[%s2866_s16 + $0x30] sm:$0xff]  ;;  %v1666_v30 = vld [vmem:[#allocation8 + $0x2f8] sm:$0xff] }
 0x18e   : > { %1517 = vmatpush2.msra.mxu1 %v879_v51  ;;  %1441 = vmatprep.subr.mxu0 %v748_v52  ;;  %v1601_v29 = vld [vmem:[#allocation8 + $0xf0] sm:$0xff]  ;;  %v1600_v34 = vld [vmem:[#allocation8 + $0xe8] sm:$0xff]  ;;  %v1598_v40 = vld [vmem:[#allocation8 + $0xd8] sm:$0xff] }
 0x18f   : > { %1518 = vmatprep.subr.mxu1 %v876_v53  ;;  %1442 = vmatpush2.msra.mxu0 %v747_v54  ;;  %v1665_v31 = vld [vmem:[#allocation8 + $0x2f0] sm:$0xff]  ;;  %v1664_v35 = vld [vmem:[#allocation8 + $0x2e8] sm:$0xff]  ;;  %v1662_v41 = vld [vmem:[#allocation8 + $0x2d8] sm:$0xff] }
 0x190   : > { %1519 = vmatpush2.msra.mxu1 %v875_v55  ;;  %1443 = vmatprep.subr.mxu0 %v744_v56  ;;  %v2368_v33 = vld [vmem:[%s2866_s16 + $0x78] sm:$0xff]  ;;  %v2370_v39 = vld [vmem:[%s2866_s16 + $0x70] sm:$0xff]  ;;  %v1591_v54 = vld [vmem:[#allocation8 + $0xa0] sm:$0xff] }
 0x191   : > { %1520 = vmatprep.subr.mxu1 %v872_v57  ;;  %1444 = vmatpush2.msra.mxu0 %v743_v58  ;;  %v1597_v42 = vld [vmem:[#allocation8 + $0xd0] sm:$0xff]  ;;  %v1596_v44 = vld [vmem:[#allocation8 + $0xc8] sm:$0xff]  ;;  %v1594_v48 = vld [vmem:[#allocation8 + $0xb8] sm:$0xff] }
 0x192   : > { %1521 = vmatpush2.msra.mxu1 %v871_v59  ;;  %1445 = vmatprep.subr.mxu0 %v740_v60  ;;  %v1661_v43 = vld [vmem:[#allocation8 + $0x2d0] sm:$0xff]  ;;  %v1660_v45 = vld [vmem:[#allocation8 + $0x2c8] sm:$0xff]  ;;  %v1658_v49 = vld [vmem:[#allocation8 + $0x2b8] sm:$0xff] }
 0x193   : > { %1522 = vmatprep.subr.mxu1 %v868_v61  ;;  %1446 = vmatpush2.msra.mxu0 %v739_v62  ;;  %v1593_v50 = vld [vmem:[#allocation8 + $0xb0] sm:$0xff]  ;;  %v1592_v52 = vld [vmem:[#allocation8 + $0xa8] sm:$0xff]  ;;  %v1655_v55 = vld [vmem:[#allocation8 + $0x2a0] sm:$0xff] }
 0x194   : > { %1523 = vmatpush2.msra.mxu1 %v867_v63  ;;  %1447 = vmatprep.subr.mxu0 %v736_v0  ;;  %v1657_v51 = vld [vmem:[#allocation8 + $0x2b0] sm:$0xff]  ;;  %v1656_v53 = vld [vmem:[#allocation8 + $0x2a8] sm:$0xff]  ;;  %v1590_v56 = vld [vmem:[#allocation8 + $0x98] sm:$0xff] }
 0x195   : > { %1524 = vmatprep.subr.mxu1 %v864_v1  ;;  %1448 = vmatpush2.msra.mxu0 %v735_v2  ;;  %v1654_v57 = vld [vmem:[#allocation8 + $0x298] sm:$0xff]  ;;  %v1589_v58 = vld [vmem:[#allocation8 + $0x90] sm:$0xff]  ;;  %v1588_v60 = vld [vmem:[#allocation8 + $0x88] sm:$0xff] }
 0x196   : > { %1525 = vmatpush2.msra.mxu1 %v863_v3  ;;  %1449 = vmatprep.subr.mxu0 %v732_v4  ;;  %v1653_v59 = vld [vmem:[#allocation8 + $0x290] sm:$0xff]  ;;  %v1652_v61 = vld [vmem:[#allocation8 + $0x288] sm:$0xff]  ;;  %v1587_v62 = vld [vmem:[#allocation8 + $0x80] sm:$0xff] }
 0x197   : > { %1526 = vmatprep.subr.mxu1 %v860_v5  ;;  %1309 = vmatprep.mubr.f32.mxu0 %v2359_v10  ;;  %v1651_v63 = vld [vmem:[#allocation8 + $0x280] sm:$0xff]  ;;  %v1586_v0 = vld [vmem:[#allocation8 + $0x78] sm:$0xff]  ;;  %v1585_v2 = vld [vmem:[#allocation8 + $0x70] sm:$0xff] }
 0x198   : > { %1450 = vmatpush2.msra.mxu0 %v731_v6  ;;  %1527 = vmatpush2.msra.mxu1 %v859_v7  ;;  %v1650_v1 = vld [vmem:[#allocation8 + $0x278] sm:$0xff]  ;;  %v1649_v3 = vld [vmem:[#allocation8 + $0x270] sm:$0xff]  ;;  %v1584_v4 = vld [vmem:[#allocation8 + $0x68] sm:$0xff] }
 0x199   : > { %1310 = vmatmul.mubr.f32.gmra.mxu0 %v2360_v12  ;;  %1451 = vmatprep.subr.mxu0 %v728_v8  ;;  %v1648_v5 = vld [vmem:[#allocation8 + $0x268] sm:$0xff]  ;;  %v1583_v6 = vld [vmem:[#allocation8 + $0x60] sm:$0xff]  ;;  %v1582_v8 = vld [vmem:[#allocation8 + $0x58] sm:$0xff] }
 0x19a   : > { %1528 = vmatprep.subr.mxu1 %v856_v9  ;;  %1386 = vmatprep.mubr.f32.mxu1 %v2361_v16  ;;  %v1647_v7 = vld [vmem:[#allocation8 + $0x260] sm:$0xff]  ;;  %v1646_v9 = vld [vmem:[#allocation8 + $0x258] sm:$0xff]  ;;  %v1581_v10 = vld [vmem:[#allocation8 + $0x50] sm:$0xff] }
 0x19b   : > { %1452 = vmatpush2.msra.mxu0 %v727_v11  ;;  %1529 = vmatpush2.msra.mxu1 %v855_v13  ;;  %v1645_v11 = vld [vmem:[#allocation8 + $0x250] sm:$0xff]  ;;  %v1580_v12 = vld [vmem:[#allocation8 + $0x48] sm:$0xff]  ;;  %v1578_v16 = vld [vmem:[#allocation8 + $0x38] sm:$0xff] }
 0x19c   : > { %1453 = vmatprep.subr.mxu0 %v724_v14  ;;  %1387 = vmatmul.mubr.f32.gmra.mxu1 %v2362_v21  ;;  %v1644_v13 = vld [vmem:[#allocation8 + $0x248] sm:$0xff]  ;;  %v1579_v14 = vld [vmem:[#allocation8 + $0x40] sm:$0xff] }
 0x19d   : > { %1530 = vmatprep.subr.mxu1 %v852_v15  ;;  %1454 = vmatpush2.msra.mxu0 %v723_v17  ;;  %v1643_v15 = vld [vmem:[#allocation8 + $0x240] sm:$0xff]  ;;  %v1642_v17 = vld [vmem:[#allocation8 + $0x238] sm:$0xff]  ;;  %v1640_v21 = vld [vmem:[#allocation8 + $0x228] sm:$0xff] }
 0x19e   : > { %1531 = vmatpush2.msra.mxu1 %v851_v18  ;;  %1455 = vmatprep.subr.mxu0 %v720_v19  ;;  %v1577_v18 = vld [vmem:[#allocation8 + $0x30] sm:$0xff] }
 0x19f   : > { %1532 = vmatprep.subr.mxu1 %v848_v20  ;;  %1456 = vmatpush2.msra.mxu0 %v719_v22  ;;  %v1641_v19 = vld [vmem:[#allocation8 + $0x230] sm:$0xff]  ;;  %v1576_v20 = vld [vmem:[#allocation8 + $0x28] sm:$0xff]  ;;  %v1575_v22 = vld [vmem:[#allocation8 + $0x20] sm:$0xff] }
 0x1a0   : > { %1457 = vmatprep.mubr.f32.mxu0 %v2363_v24  ;;  %1533 = vmatpush2.msra.mxu1 %v847_v23  ;;  %v1639_v23 = vld [vmem:[#allocation8 + $0x220] sm:$0xff]  ;;  %v1574_v24 = vld [vmem:[#allocation8 + $0x18] sm:$0xff] }
 0x1a1   : > { %1534 = vmatprep.mubr.f32.mxu1 %v2364_v25  ;;  %1458 = vmatmul.mubr.f32.vlgmr.msra.gmra.mxu0 %v2365_v27  ;;  %v1638_v25 = vld [vmem:[#allocation8 + $0x218] sm:$0xff]  ;;  %v1637_v27 = vld [vmem:[#allocation8 + $0x210] sm:$0xff] }
 0x1a2   : > { %1535 = vmatmul.mubr.f32.vlgmr.msra.gmra.mxu1 %v2366_v28  ;;  %1463 = vmatprep.mubr.f32.mxu0 %v2367_v32  ;;  %v1572_v28 = vld [vmem:[#allocation8 + $0x8] sm:$0xff]  ;;  %v1634_v32 = vld [vmem:[#allocation8 + $0x1f8] sm:$0xff] }
 0x1a3   : > { %1540 = vmatprep.mubr.f32.mxu1 %v2368_v33  ;;  %1711 = vmatprep.subr.mxu0 %v1602_v26  ;;  %v1573_v26 = vld [vmem:[#allocation8 + $0x10] sm:$0xff]  ;;  %v1698_v33 = vld [vmem:[#allocation8 + $0x3f8] sm:$0xff] }
 0x1a4   : > { %1788 = vmatprep.subr.mxu1 %v1666_v30  ;;  %1712 = vmatpush1.msra.mxu0 %v1601_v29  ;;  %v1636_v29 = vld [vmem:[#allocation8 + $0x208] sm:$0xff]  ;;  %v1571_v30 = vld [vmem:[#allocation8] sm:$0xff] }
 0x1a5   : > { %1789 = vmatpush1.msra.mxu1 %v1665_v31  ;;  %1464 = vmatmul.mubr.f32.gmra.mxu0 %v2369_v38  ;;  %v1635_v31 = vld [vmem:[#allocation8 + $0x200] sm:$0xff]  ;;  %v1696_v38 = vld [vmem:[#allocation8 + $0x3e8] sm:$0xff] }
 0x1a6   : > { %1541 = vmatmul.mubr.f32.gmra.mxu1 %v2370_v39  ;;  %1713 = vmatprep.subr.mxu0 %v1600_v34  ;;  %v1633_v34 = vld [vmem:[#allocation8 + $0x1f0] sm:$0xff]  ;;  %v1631_v39 = vld [vmem:[#allocation8 + $0x1e0] sm:$0xff] }
 0x1a7   : > { %1790 = vmatprep.subr.mxu1 %v1664_v35  ;;  %1714 = vmatpush1.msra.mxu0 %v1599_v36  ;;  %v1697_v35 = vld [vmem:[#allocation8 + $0x3f0] sm:$0xff]  ;;  %v911_v36 = vlaneseq }
 0x1a8   : > { %1791 = vmatpush1.msra.mxu1 %v1663_v37  ;;  %1715 = vmatprep.subr.mxu0 %v1598_v40  ;;  %v1632_v37 = vld [vmem:[#allocation8 + $0x1e8] sm:$0xff]  ;;  %v1695_v40 = vld [vmem:[#allocation8 + $0x3e0] sm:$0xff] }
 0x1a9   : > { %1792 = vmatprep.subr.mxu1 %v1662_v41  ;;  %1716 = vmatpush1.msra.mxu0 %v1597_v42  ;;  %v1630_v41 = vld [vmem:[#allocation8 + $0x1d8] sm:$0xff] }
 0x1aa   : > { %1793 = vmatpush1.msra.mxu1 %v1661_v43  ;;  %1717 = vmatprep.subr.mxu0 %v1596_v44  ;;  %v1694_v42 = vld [vmem:[#allocation8 + $0x3d8] sm:$0xff]  ;;  %v1629_v43 = vld [vmem:[#allocation8 + $0x1d0] sm:$0xff] }
 0x1ab   : > { %1794 = vmatprep.subr.mxu1 %v1660_v45  ;;  %1718 = vmatpush1.msra.mxu0 %v1595_v46  ;;  %v1693_v44 = vld [vmem:[#allocation8 + $0x3d0] sm:$0xff]  ;;  %v2916_v45 = vshrl.u32 %v911_v36, 7  ;;  %v1628_v46 = vld [vmem:[#allocation8 + $0x1c8] sm:$0xff] }
 0x1ac   : > { %1795 = vmatpush1.msra.mxu1 %v1659_v47  ;;  %1719 = vmatprep.subr.mxu0 %v1594_v48  ;;  %v1692_v47 = vld [vmem:[#allocation8 + $0x3c8] sm:$0xff]  ;;  %v1627_v48 = vld [vmem:[#allocation8 + $0x1c0] sm:$0xff] }
 0x1ad   : > { %1796 = vmatprep.subr.mxu1 %v1658_v49  ;;  %1720 = vmatpush1.msra.mxu0 %v1593_v50  ;;  %v1691_v49 = vld [vmem:[#allocation8 + $0x3c0] sm:$0xff]  ;;  %v1626_v50 = vld [vmem:[#allocation8 + $0x1b8] sm:$0xff] }
 0x1ae   : > { %1797 = vmatpush1.msra.mxu1 %v1657_v51  ;;  %1721 = vmatprep.subr.mxu0 %v1592_v52  ;;  %v1690_v51 = vld [vmem:[#allocation8 + $0x3b8] sm:$0xff]  ;;  %v1625_v52 = vld [vmem:[#allocation8 + $0x1b0] sm:$0xff] }
 0x1af   : > { %1798 = vmatprep.subr.mxu1 %v1656_v53  ;;  %1722 = vmatpush1.msra.mxu0 %v1591_v54  ;;  %v1689_v53 = vld [vmem:[#allocation8 + $0x3b0] sm:$0xff]  ;;  %v913_v54 = vsub.s32 0, %v2916_v45 }
 0x1b0   : > { %1799 = vmatpush1.msra.mxu1 %v1655_v55  ;;  %1723 = vmatprep.subr.mxu0 %v1590_v56  ;;  %v997_v55 = vpop.f32.mrf.mxu0  ;;  %v1624_v56 = vld [vmem:[#allocation8 + $0x1a8] sm:$0xff] }
 0x1b1   : > { %1800 = vmatprep.subr.mxu1 %v1654_v57  ;;  %1724 = vmatpush1.msra.mxu0 %v1589_v58  ;;  %v1688_v57 = vld [vmem:[#allocation8 + $0x3a8] sm:$0xff]  ;;  %v2919_v58 = vld [vmem:[#allocation7] sm:$0xf] }
 0x1b2   : > { %1801 = vmatpush1.msra.mxu1 %v1653_v59  ;;  %1725 = vmatprep.subr.mxu0 %v1588_v60  ;;  %v1623_v59 = vld [vmem:[#allocation8 + $0x1a0] sm:$0xff] }
 0x1b3   : > { %1802 = vmatprep.subr.mxu1 %v1652_v61  ;;  %1726 = vmatpush1.msra.mxu0 %v1587_v62  ;;  %v1687_v60 = vld [vmem:[#allocation8 + $0x3a0] sm:$0xff]  ;;  %v917_v61 = vsub.s32 1, %v2916_v45  ;;  %v1622_v62 = vld [vmem:[#allocation8 + $0x198] sm:$0xff] }
 0x1b4   : > { %1803 = vmatpush1.msra.mxu1 %v1651_v63  ;;  %1727 = vmatprep.subr.mxu0 %v1586_v0  ;;  %v1686_v63 = vld [vmem:[#allocation8 + $0x398] sm:$0xff]  ;;  %v1074_v0 = vpop.f32.mrf.mxu1 }
 0x1b5   : > { %1804 = vmatprep.subr.mxu1 %v1650_v1  ;;  %1728 = vmatpush1.msra.mxu0 %v1585_v2  ;;  %v1621_v1 = vld [vmem:[#allocation8 + $0x190] sm:$0xff] }
 0x1b6   : > { %1805 = vmatpush1.msra.mxu1 %v1649_v3  ;;  %1729 = vmatprep.subr.mxu0 %v1584_v4  ;;  %v1685_v2 = vld [vmem:[#allocation8 + $0x390] sm:$0xff]  ;;  %v914_v3 = vrot.slane %v2919_v58, %v913_v54  ;;  %v999_v4 = vpop.f32.mrf.mxu0 }
 0x1b7   : > { %1806 = vmatprep.subr.mxu1 %v1648_v5  ;;  %1730 = vmatpush1.msra.mxu0 %v1583_v6  ;;  %v1620_v5 = vld [vmem:[#allocation8 + $0x188] sm:$0xff] }
 0x1b8   : > { %1807 = vmatpush1.msra.mxu1 %v1647_v7  ;;  %1731 = vmatprep.subr.mxu0 %v1582_v8  ;;  %v1684_v6 = vld [vmem:[#allocation8 + $0x388] sm:$0xff]  ;;  %v1619_v7 = vld [vmem:[#allocation8 + $0x180] sm:$0xff]  ;;  %v918_v8 = vrot.slane %v2919_v58, %v917_v61 }
 0x1b9   : > { %1808 = vmatprep.subr.mxu1 %v1646_v9  ;;  %1732 = vmatpush1.msra.mxu0 %v1581_v10  ;;  %v1618_v10 = vld [vmem:[#allocation8 + $0x178] sm:$0xff] }
 0x1ba   : > { %1809 = vmatpush1.msra.mxu1 %v1645_v11  ;;  %1733 = vmatprep.subr.mxu0 %v1580_v12  ;;  %v1076_v11 = vpop.f32.mrf.mxu1  ;;  %v1617_v12 = vld [vmem:[#allocation8 + $0x170] sm:$0xff] }
 0x1bb   : > { %1810 = vmatprep.subr.mxu1 %v1644_v13  ;;  %1734 = vmatpush1.msra.mxu0 %v1579_v14  ;;  %v998_v13 = vadd.f32 %v997_v55, %v914_v3  ;;  %v1616_v14 = vld [vmem:[#allocation8 + $0x168] sm:$0xff] }
 0x1bc   : > { %1811 = vmatpush1.msra.mxu1 %v1643_v15  ;;  %1735 = vmatprep.subr.mxu0 %v1578_v16 }
 0x1bd   : > { %1812 = vmatprep.subr.mxu1 %v1642_v17  ;;  %1736 = vmatpush1.msra.mxu0 %v1577_v18  ;;  %v1615_v17 = vld [vmem:[#allocation8 + $0x160] sm:$0xff]  ;;  %v1000_v18 = vadd.f32 %v999_v4, %v918_v8 }
 0x1be   : > { %1813 = vmatpush1.msra.mxu1 %v1641_v19  ;;  %1737 = vmatprep.subr.mxu0 %v1576_v20  ;;  %v1614_v19 = vld [vmem:[#allocation8 + $0x158] sm:$0xff] }
 0x1bf   : > { %1814 = vmatprep.subr.mxu1 %v1640_v21  ;;  %1738 = vmatpush1.msra.mxu0 %v1575_v22  ;;  %v1613_v21 = vld [vmem:[#allocation8 + $0x150] sm:$0xff]  ;;  %v1075_v22 = vadd.f32 %v1074_v0, %v998_v13  ;;  %v1676_v0 = vld [vmem:[#allocation8 + $0x348] sm:$0xff]  ;;  %v1670_v13 = vld [vmem:[#allocation8 + $0x318] sm:$0xff] }
 0x1c0   : > { %1815 = vmatpush1.msra.mxu1 %v1639_v23  ;;  %1739 = vmatprep.subr.mxu0 %v1574_v24  ;;  %v1612_v23 = vld [vmem:[#allocation8 + $0x148] sm:$0xff] }
 0x1c1   : > { %1816 = vmatprep.subr.mxu1 %v1638_v25  ;;  %1740 = vmatpush1.msra.mxu0 %v1573_v26  ;;  %v1611_v25 = vld [vmem:[#allocation8 + $0x140] sm:$0xff]  ;;  %v1077_v26 = vadd.f32 %v1076_v11, %v1000_v18 }
 0x1c2   : > { %1817 = vmatpush1.msra.mxu1 %v1637_v27  ;;  %1741 = vmatprep.subr.mxu0 %v1572_v28  ;;  %v1671_v11 = vld [vmem:[#allocation8 + $0x320] sm:$0xff] }
 0x1c3   : > { %1818 = vmatprep.subr.mxu1 %v1636_v29  ;;  %1742 = vmatpush1.msra.mxu0 %v1571_v30  ;;  %v1610_v29 = vld [vmem:[#allocation8 + $0x138] sm:$0xff]  ;;  %v1683_v30 = vld [vmem:[#allocation8 + $0x380] sm:$0xff] }
 0x1c4   : > { %1819 = vmatpush1.msra.mxu1 %v1635_v31  ;;  %1743 = vmatprep.subr.mxu0 %v1634_v32  ;;  %v1682_v31 = vld [vmem:[#allocation8 + $0x378] sm:$0xff]  ;;  %v1667_v18 = vld [vmem:[#allocation8 + $0x300] sm:$0xff] }
 0x1c5   : > { %1820 = vmatprep.subr.mxu1 %v1698_v33  ;;  %1744 = vmatpush2.msra.mxu0 %v1633_v34 }
 0x1c6   : > { %1821 = vmatpush2.msra.mxu1 %v1697_v35  ;;  %1745 = vmatprep.subr.mxu0 %v1632_v37  ;;  %v1609_v35 = vld [vmem:[#allocation8 + $0x130] sm:$0xff] }
 0x1c7   : > { %1822 = vmatprep.subr.mxu1 %v1696_v38  ;;  %1746 = vmatpush2.msra.mxu0 %v1631_v39  ;;  %v1608_v38 = vld [vmem:[#allocation8 + $0x128] sm:$0xff] }
 0x1c8   : > { %1823 = vmatpush2.msra.mxu1 %v1695_v40  ;;  %1747 = vmatprep.subr.mxu0 %v1630_v41  ;;  %v1607_v40 = vld [vmem:[#allocation8 + $0x120] sm:$0xff]  ;;  %v1681_v41 = vld [vmem:[#allocation8 + $0x370] sm:$0xff] }
 0x1c9   : > { %1824 = vmatprep.subr.mxu1 %v1694_v42  ;;  %1748 = vmatpush2.msra.mxu0 %v1629_v43 }
 0x1ca   : > { %1825 = vmatpush2.msra.mxu1 %v1693_v44  ;;  %1749 = vmatprep.subr.mxu0 %v1628_v46  ;;  %v1606_v44 = vld [vmem:[#allocation8 + $0x118] sm:$0xff]  ;;  %v1680_v46 = vld [vmem:[#allocation8 + $0x368] sm:$0xff] }
 0x1cb   : > { %1826 = vmatprep.subr.mxu1 %v1692_v47  ;;  %1750 = vmatpush2.msra.mxu0 %v1627_v48 }
 0x1cc   : > { %1827 = vmatpush2.msra.mxu1 %v1691_v49  ;;  %1751 = vmatprep.subr.mxu0 %v1626_v50  ;;  %v1605_v49 = vld [vmem:[#allocation8 + $0x110] sm:$0xff]  ;;  %v1604_v50 = vld [vmem:[#allocation8 + $0x108] sm:$0xff] }
 0x1cd   : > { %1828 = vmatprep.subr.mxu1 %v1690_v51  ;;  %1752 = vmatpush2.msra.mxu0 %v1625_v52  ;;  %v1679_v51 = vld [vmem:[#allocation8 + $0x360] sm:$0xff] }
 0x1ce   : > { %1829 = vmatpush2.msra.mxu1 %v1689_v53  ;;  %1753 = vmatprep.subr.mxu0 %v1624_v56  ;;  %v1678_v56 = vld [vmem:[#allocation8 + $0x358] sm:$0xff] }
 0x1cf   : > { %1830 = vmatprep.subr.mxu1 %v1688_v57  ;;  %1754 = vmatpush2.msra.mxu0 %v1623_v59  ;;  %v1603_v59 = vld [vmem:[#allocation8 + $0x100] sm:$0xff] }
 0x1d0   : > { %1831 = vmatpush2.msra.mxu1 %v1687_v60  ;;  %1755 = vmatprep.subr.mxu0 %v1622_v62  ;;  %v1677_v60 = vld [vmem:[#allocation8 + $0x350] sm:$0xff] }
 0x1d1   : > { %1832 = vmatprep.subr.mxu1 %v1686_v63  ;;  %1756 = vmatpush2.msra.mxu0 %v1621_v1 }
 0x1d2   : > { %v1003_v9 = vpop.f32.mrf.mxu0  ;;  %1833 = vmatpush2.msra.mxu1 %v1685_v2  ;;  %1757 = vmatprep.subr.mxu0 %v1620_v5  ;;  %v1675_v2 = vld [vmem:[#allocation8 + $0x340] sm:$0xff]  ;;  %v1674_v5 = vld [vmem:[#allocation8 + $0x338] sm:$0xff] }
 0x1d3   : > { %1834 = vmatprep.subr.mxu1 %v1684_v6  ;;  %1758 = vmatpush2.msra.mxu0 %v1619_v7  ;;  %v1004_v27 = vadd.f32 %v1003_v9, %v914_v3  ;;  %v1673_v7 = vld [vmem:[#allocation8 + $0x330] sm:$0xff]  ;;  %v1672_v9 = vld [vmem:[#allocation8 + $0x328] sm:$0xff] }
 0x1d4   : > { %1759 = vmatprep.subr.mxu0 %v1618_v10  ;;  %v1005_v15 = vpop.f32.mrf.mxu0  ;;  %1835 = vmatpush2.msra.mxu1 %v1683_v30  ;;  %v2956_v30 = vld [vmem:[#allocation11 + $0x50] sm:$0xff] }
 0x1d5   : > { %v1080_v16 = vpop.f32.mrf.mxu1  ;;  %1760 = vmatpush2.msra.mxu0 %v1617_v12  ;;  %v1006_v32 = vadd.f32 %v1005_v15, %v918_v8  ;;  %1836 = vmatprep.subr.mxu1 %v1682_v31  ;;  %v2959_v31 = vld [vmem:[#allocation11 + $0xc8] sm:$0xff] }
 0x1d6   : > { %1761 = vmatprep.subr.mxu0 %v1616_v14  ;;  %v1081_v42 = vadd.f32 %v1080_v16, %v1004_v27  ;;  %1837 = vmatpush2.msra.mxu1 %v1681_v41  ;;  %v1669_v14 = vld [vmem:[#allocation8 + $0x310] sm:$0xff]  ;;  %v1668_v16 = vld [vmem:[#allocation8 + $0x308] sm:$0xff]  ;;  %v2947_v27 = vld [vmem:[#allocation11 + $0xd8] sm:$0xff] }
 0x1d7   : > { %v1082_v20 = vpop.f32.mrf.mxu1  ;;  %1762 = vmatpush2.msra.mxu0 %v1615_v17  ;;  %1838 = vmatprep.subr.mxu1 %v1680_v46  ;;  %v2989_v41 = vld [vmem:[#allocation11 + $0xa0] sm:$0xff]  ;;  %v925_v46 = vsub.s32 3, %v2916_v45 }
 0x1d8   : > { %1763 = vmatprep.subr.mxu0 %v1614_v19  ;;  %v1083_v47 = vadd.f32 %v1082_v20, %v1006_v32  ;;  %1839 = vmatpush2.msra.mxu1 %v1679_v51  ;;  %v1908_v19 = vld [vmem:[#allocation11 + $0xf8] sm:$0xff]  ;;  %v2962_v32 = vld [vmem:[#allocation11 + $0x48] sm:$0xff] }
 0x1d9   : > { %v1151_v24 = vpop.f32.mrf.mxu0  ;;  %1764 = vmatpush2.msra.mxu0 %v1613_v21  ;;  %1840 = vmatprep.subr.mxu1 %v1678_v56  ;;  %v2928_v20 = vld [vmem:[#allocation11 + $0x78] sm:$0xff]  ;;  %v2930_v21 = vld [vmem:[#allocation11 + $0xf0] sm:$0xff] }
 0x1da   : > { %v1152_v28 = vadd.f32 %v1151_v24, %v1075_v22  ;;  %1765 = vmatprep.subr.mxu0 %v1612_v23  ;;  %1841 = vmatpush2.msra.mxu1 %v1677_v60  ;;  %v2932_v22 = vld [vmem:[#allocation11 + $0x70] sm:$0xff]  ;;  %v2935_v23 = vld [vmem:[#allocation11 + $0xe8] sm:$0xff] }
 0x1db   : > { %v1228_v33 = vpop.f32.mrf.mxu1  ;;  %v1153_v34 = vpop.f32.mrf.mxu0  ;;  %1766 = vmatpush2.msra.mxu0 %v1611_v25  ;;  %1842 = vmatprep.subr.mxu1 %v1676_v0  ;;  %v2938_v24 = vld [vmem:[#allocation11 + $0x68] sm:$0xff]  ;;  %v2941_v25 = vld [vmem:[#allocation11 + $0xe0] sm:$0xff] }
 0x1dc   : > { %v1229_v36 = vadd.f32 %v1228_v33, %v1152_v28  ;;  %v1154_v37 = vadd.f32 %v1153_v34, %v1077_v26  ;;  %1767 = vmatprep.subr.mxu0 %v1610_v29  ;;  %1843 = vmatpush2.msra.mxu1 %v1675_v2  ;;  %v2944_v26 = vld [vmem:[#allocation11 + $0x60] sm:$0xff]  ;;  %v2950_v28 = vld [vmem:[#allocation11 + $0x58] sm:$0xff]  ;;  %v2953_v29 = vld [vmem:[#allocation11 + $0xd0] sm:$0xff] }
 0x1dd   : > { %v1230_v39 = vpop.f32.mrf.mxu1  ;;  %1768 = vmatpush2.msra.mxu0 %v1609_v35  ;;  %1844 = vmatprep.subr.mxu1 %v1674_v5  ;;  %v2965_v33 = vld [vmem:[#allocation11 + $0xc0] sm:$0xff]  ;;  %v2971_v35 = vld [vmem:[#allocation11 + $0xb8] sm:$0xff] }
 0x1de   : > { %v1231_v43 = vadd.f32 %v1230_v39, %v1154_v37  ;;  %1769 = vmatprep.subr.mxu0 %v1608_v38  ;;  %v1555_v52 = vmul.f32 0.2, %v1229_v36  ;;  %vm1547_vm1 = vcmp.gt.f32.partialorder %v1229_v36, 0.0  ;;  %1845 = vmatpush2.msra.mxu1 %v1673_v7  ;;  %v2968_v34 = vld [vmem:[#allocation11 + $0x40] sm:$0xff]  ;;  %v2977_v37 = vld [vmem:[#allocation11 + $0xb0] sm:$0xff]  ;;  %v2983_v39 = vld [vmem:[#allocation11 + $0xa8] sm:$0xff] }
 0x1df   : > { %v1157_v48 = vpop.f32.mrf.mxu0  ;;  %1770 = vmatpush2.msra.mxu0 %v1607_v40  ;;  %1846 = vmatprep.subr.mxu1 %v1672_v9  ;;  %v2980_v38 = vld [vmem:[#allocation11 + $0x30] sm:$0xff]  ;;  %v2986_v40 = vld [vmem:[#allocation11 + $0x28] sm:$0xff] }
 0x1e0   : > { %v1556_v53 = vmul.f32 0.2, %v1231_v43  ;;  %v1158_v55 = vadd.f32 %v1157_v48, %v1081_v42  ;;  %vm1548_vm0 = vcmp.gt.f32.partialorder %v1231_v43, 0.0  ;;  %1771 = vmatprep.subr.mxu0 %v1606_v44  ;;  %v1563_v3 = vsel %vm1547_vm1, %v1229_v36, %v1555_v52  ;;  %1847 = vmatpush2.msra.mxu1 %v1671_v11  ;;  %v2974_v36 = vld [vmem:[#allocation11 + $0x38] sm:$0xff] }
 0x1e1   : > { %v1159_v57 = vpop.f32.mrf.mxu0  ;;  %1772 = vmatpush2.msra.mxu0 %v1605_v49  ;;  %1848 = vmatprep.subr.mxu1 %v1670_v13  ;;  %v921_v42 = vsub.s32 2, %v2916_v45  ;;  %v926_v49 = vrot.slane %v2919_v58, %v925_v46 }
 0x1e2   : > { %v1160_v62 = vadd.f32 %v1159_v57, %v1083_v47  ;;  %v1564_v63 = vsel %vm1548_vm0, %v1231_v43, %v1556_v53  ;;  %v1234_v1 = vpop.f32.mrf.mxu1  ;;  %1773 = vmatprep.subr.mxu0 %v1604_v50  ;;  %1849 = vmatpush2.msra.mxu1 %v1669_v14 }
 0x1e3   : > { %1775 = vmatprep.mubr.f32.mxu0 %v1564_v63  ;;  %v1235_v4 = vadd.f32 %v1234_v1, %v1158_v55  ;;  %1774 = vmatpush2.msra.mxu0 %v1603_v59  ;;  %v922_v47 = vrot.slane %v2919_v58, %v921_v42 }
 0x1e4   : > { %v1236_v6 = vpop.f32.mrf.mxu1  ;;  %1776 = vmatmul.mubr.f32.vlgmr.msra.gmra.mxu0 %v1563_v3  ;;  %1850 = vmatprep.subr.mxu1 %v1668_v16 }
 0x1e5   : > { %v1237_v8 = vadd.f32 %v1236_v6, %v1160_v62  ;;  %v1559_v10 = vmul.f32 0.2, %v1235_v4  ;;  %vm1551_vm3 = vcmp.gt.f32.partialorder %v1235_v4, 0.0  ;;  %1851 = vmatpush2.msra.mxu1 %v1667_v18  ;;  %2168 = vmatprep.subr.mxu0 %v1908_v19 }
 0x1e6   : > { %2206 = vmatprep.subr.mxu1 %v1908_v19  ;;  %2169 = vmatpush3.msra.mxu0 %v2928_v20 }
 0x1e7   : > { %v1560_v12 = vmul.f32 0.2, %v1237_v8  ;;  %vm1552_vm2 = vcmp.gt.f32.partialorder %v1237_v8, 0.0  ;;  %v1567_v17 = vsel %vm1551_vm3, %v1235_v4, %v1559_v10  ;;  %2170 = vmatprep.subr.mxu0 %v2930_v21 }
 0x1e8   : > { %2171 = vmatpush3.msra.mxu0 %v2932_v22 }
 0x1e9   : > { %v1568_v15 = vsel %vm1552_vm2, %v1237_v8, %v1560_v12  ;;  %2172 = vmatprep.subr.mxu0 %v2935_v23 }
 0x1ea   : > { %1781 = vmatprep.mubr.f32.mxu0 %v1568_v15  ;;  %2173 = vmatpush3.msra.mxu0 %v2938_v24 }
 0x1eb   : > { %1782 = vmatmul.mubr.f32.gmra.mxu0 %v1567_v17  ;;  %2174 = vmatprep.subr.mxu0 %v2941_v25 }
 0x1ec   : > { %2175 = vmatpush3.msra.mxu0 %v2944_v26 }
 0x1ed   : > { %2176 = vmatprep.subr.mxu0 %v2947_v27 }
 0x1ee   : > { %2177 = vmatpush3.msra.mxu0 %v2950_v28 }
 0x1ef   : > { %2178 = vmatprep.subr.mxu0 %v2953_v29 }
 0x1f0   : > { %2179 = vmatpush3.msra.mxu0 %v2956_v30 }
 0x1f1   : > { %2180 = vmatprep.subr.mxu0 %v2959_v31 }
 0x1f2   : > { %2181 = vmatpush3.msra.mxu0 %v2962_v32 }
 0x1f3   : > { %2182 = vmatprep.subr.mxu0 %v2965_v33 }
 0x1f4   : > { %2183 = vmatpush3.msra.mxu0 %v2968_v34 }
 0x1f5   : > { %2184 = vmatprep.subr.mxu0 %v2971_v35 }
 0x1f6   : > { %2185 = vmatpush3.msra.mxu0 %v2974_v36 }
 0x1f7   : > { %2186 = vmatprep.subr.mxu0 %v2977_v37 }
 0x1f8   : > { %2187 = vmatpush3.msra.mxu0 %v2980_v38 }
 0x1f9   : > { %2188 = vmatprep.subr.mxu0 %v2983_v39 }
 0x1fa   : > { %2189 = vmatpush3.msra.mxu0 %v2986_v40 }
 0x1fb   : > { %2190 = vmatprep.subr.mxu0 %v2989_v41 }
 0x21d   : > { %v1305_v43 = vpop.f32.mrf.mxu0 }
 0x21e   : > { %v1306_v52 = vadd.f32 %v1305_v43, %v922_v47 }
 0x21f   : > { %v1382_v44 = vpop.f32.mrf.mxu1  ;;  %v1307_v48 = vpop.f32.mrf.mxu0 }
 0x220   : > { %v1308_v55 = vadd.f32 %v1307_v48, %v926_v49  ;;  %v1383_v59 = vadd.f32 %v1382_v44, %v1306_v52 }
 0x221   : > { %v1384_v50 = vpop.f32.mrf.mxu1 }
 0x222   : > { %v1385_v0 = vadd.f32 %v1384_v50, %v1308_v55 }
 0x259   : > { %v1311_v51 = vpop.f32.mrf.mxu0 }
 0x25a   : > { %v1312_v60 = vadd.f32 %v1311_v51, %v922_v47 }
 0x25b   : > { %v1313_v57 = vpop.f32.mrf.mxu0 }
 0x25c   : > { %v1388_v53 = vpop.f32.mrf.mxu1  ;;  %v1314_v1 = vadd.f32 %v1313_v57, %v926_v49 }
 0x25d   : > { %v1389_v5 = vadd.f32 %v1388_v53, %v1312_v60 }
 0x25e   : > { %v1390_v56 = vpop.f32.mrf.mxu1 }
 0x25f   : > { %v1391_v9 = vadd.f32 %v1390_v56, %v1314_v1 }
 0x261   : > { %v1459_v62 = vpop.f32.mrf.mxu0 }
 0x262   : > { %v1536_v63 = vpop.f32.mrf.mxu1  ;;  %v1460_v2 = vadd.f32 %v1459_v62, %v1383_v59 }
 0x263   : > { %v1461_v3 = vpop.f32.mrf.mxu0 }
 0x264   : > { %v1538_v4 = vpop.f32.mrf.mxu1  ;;  %v1537_v6 = vadd.f32 %v1536_v63, %v1460_v2  ;;  %v1462_v7 = vadd.f32 %v1461_v3, %v1385_v0  ;;  %v2159_v63 = vld [vmem:[#allocation13] ss:$0 sm:$0xff] }
 0x265   : > { %v1465_v58 = vpop.f32.mrf.mxu0 }
 0x266   : > { %v1542_v8 = vpop.f32.mrf.mxu1  ;;  %v1539_v10 = vadd.f32 %v1538_v4, %v1462_v7  ;;  %v1466_v11 = vadd.f32 %v1465_v58, %v1389_v5  ;;  %v1557_v12 = vmul.f32 0.2, %v1537_v6  ;;  %vm1549_vm4 = vcmp.gt.f32.partialorder %v1537_v6, 0.0 }
 0x267   : > { %v1467_v13 = vpop.f32.mrf.mxu0 }
 0x268   : > { %v1558_v14 = vmul.f32 0.2, %v1539_v10  ;;  %v1543_v15 = vadd.f32 %v1542_v8, %v1466_v11  ;;  %v1468_v16 = vadd.f32 %v1467_v13, %v1391_v9  ;;  %v1544_v17 = vpop.f32.mrf.mxu1  ;;  %vm1550_vm5 = vcmp.gt.f32.partialorder %v1539_v10, 0.0 }
 0x269   : > { %v1565_v42 = vsel %vm1549_vm4, %v1537_v6, %v1557_v12 }
 0x26a   : > { %v1545_v18 = vadd.f32 %v1544_v17, %v1468_v16  ;;  %v1566_v19 = vsel %vm1550_vm5, %v1539_v10, %v1558_v14  ;;  %v1561_v43 = vmul.f32 0.2, %v1543_v15  ;;  %vm1553_vm7 = vcmp.gt.f32.partialorder %v1543_v15, 0.0 }
 0x26b   : > { %1852 = vmatprep.mubr.f32.mxu1 %v1566_v19 }
 0x26c   : > { %v1562_v44 = vmul.f32 0.2, %v1545_v18  ;;  %1853 = vmatmul.mubr.f32.vlgmr.msra.gmra.mxu1 %v1565_v42  ;;  %vm1554_vm6 = vcmp.gt.f32.partialorder %v1545_v18, 0.0  ;;  %v1569_v47 = vsel %vm1553_vm7, %v1543_v15, %v1561_v43 }
 0x26d   : > { %2222 = vmatpush3.msra.mxu1 %v2928_v20  ;;  %v1881_v20 = vld [vmem:[#allocation11 + $0x20] sm:$0xff] }
 0x26e   : > { %v1570_v46 = vsel %vm1554_vm6, %v1545_v18, %v1562_v44  ;;  %2207 = vmatprep.subr.mxu1 %v2930_v21  ;;  %2191 = vmatpush3.msra.mxu0 %v1881_v20  ;;  %v1896_v21 = vld [vmem:[#allocation11 + $0x98] sm:$0xff] }
 0x26f   : > { %1858 = vmatprep.mubr.f32.mxu1 %v1570_v46  ;;  %2223 = vmatpush3.msra.mxu1 %v2932_v22  ;;  %v1880_v22 = vld [vmem:[#allocation11 + $0x18] sm:$0xff] }
 0x270   : > { %1859 = vmatmul.mubr.f32.gmra.mxu1 %v1569_v47  ;;  %2208 = vmatprep.subr.mxu1 %v2935_v23  ;;  %v1895_v23 = vld [vmem:[#allocation11 + $0x90] sm:$0xff] }
 0x271   : > { %2224 = vmatpush3.msra.mxu1 %v2938_v24  ;;  %2192 = vmatprep.subr.mxu0 %v1896_v21  ;;  %v1879_v24 = vld [vmem:[#allocation11 + $0x10] sm:$0xff] }
 0x272   : > { %2209 = vmatprep.subr.mxu1 %v2941_v25  ;;  %2193 = vmatpush3.msra.mxu0 %v1880_v22  ;;  %v1894_v25 = vld [vmem:[#allocation11 + $0x88] sm:$0xff] }
 0x273   : > { %2225 = vmatpush3.msra.mxu1 %v2944_v26  ;;  %2194 = vmatprep.subr.mxu0 %v1895_v23  ;;  %v1878_v26 = vld [vmem:[#allocation11 + $0x8] sm:$0xff] }
 0x274   : > { %2210 = vmatprep.subr.mxu1 %v2947_v27  ;;  %2195 = vmatpush3.msra.mxu0 %v1879_v24  ;;  %v1893_v27 = vld [vmem:[#allocation11 + $0x80] sm:$0xff] }
 0x275   : > { %2226 = vmatpush3.msra.mxu1 %v2950_v28  ;;  %2196 = vmatprep.subr.mxu0 %v1894_v25  ;;  %v1877_v28 = vld [vmem:[#allocation11] sm:$0xff] }
 0x276   : > { %2211 = vmatprep.subr.mxu1 %v2953_v29  ;;  %2197 = vmatpush3.msra.mxu0 %v1878_v26 }
 0x277   : > { %2227 = vmatpush3.msra.mxu1 %v2956_v30  ;;  %2198 = vmatprep.subr.mxu0 %v1893_v27  ;;  %v1699_v30 = vld [vmem:[#allocation10] sm:$0x3] }
 0x278   : > { %2212 = vmatprep.subr.mxu1 %v2959_v31  ;;  %2199 = vmatpush3.msra.mxu0 %v1877_v28 }
 0x279   : > { %2228 = vmatpush3.msra.mxu1 %v2962_v32  ;;  %v1704_v32 = vrot.slane %v1699_v30, %v913_v54 }
 0x27a   : > { %2213 = vmatprep.subr.mxu1 %v2965_v33  ;;  %v1708_v33 = vrot.slane %v1699_v30, %v917_v61 }
 0x27b   : > { %2229 = vmatpush3.msra.mxu1 %v2968_v34 }
 0x27c   : > { %2214 = vmatprep.subr.mxu1 %v2971_v35 }
 0x27d   : > { %2230 = vmatpush3.msra.mxu1 %v2974_v36 }
 0x27e   : > { %2215 = vmatprep.subr.mxu1 %v2977_v37 }
 0x27f   : > { %2231 = vmatpush3.msra.mxu1 %v2980_v38 }
 0x280   : > { %2216 = vmatprep.subr.mxu1 %v2983_v39 }
 0x281   : > { %2232 = vmatpush3.msra.mxu1 %v2986_v40 }
 0x282   : > { %2217 = vmatprep.subr.mxu1 %v2989_v41 }
 0x283   : > { %2233 = vmatpush3.msra.mxu1 %v1881_v20 }
 0x284   : > { %2218 = vmatprep.subr.mxu1 %v1896_v21 }
 0x285   : > { %2234 = vmatpush3.msra.mxu1 %v1880_v22 }
 0x286   : > { %2219 = vmatprep.subr.mxu1 %v1895_v23 }
 0x287   : > { %2235 = vmatpush3.msra.mxu1 %v1879_v24 }
 0x288   : > { %2220 = vmatprep.subr.mxu1 %v1894_v25 }
 0x289   : > { %2236 = vmatpush3.msra.mxu1 %v1878_v26 }
 0x28a   : > { %2221 = vmatprep.subr.mxu1 %v1893_v27 }
 0x28b   : > { %2237 = vmatpush3.msra.mxu1 %v1877_v28 }
 0x2a4   : > { %v1777_v29 = vpop.f32.mrf.mxu0 }
 0x2a5   : > { %v1778_v35 = vadd.f32 %v1777_v29, %v1704_v32 }
 0x2a6   : > { %v1779_v31 = vpop.f32.mrf.mxu0 }
 0x2a7   : > { %v1780_v37 = vadd.f32 %v1779_v31, %v1708_v33 }
 0x2ab   : > { %v1783_v34 = vpop.f32.mrf.mxu0 }
 0x2ac   : > { %v1784_v41 = vadd.f32 %v1783_v34, %v1704_v32 }
 0x2ad   : > { %v1785_v38 = vpop.f32.mrf.mxu0 }
 0x2ae   : > { %v1786_v49 = vadd.f32 %v1785_v38, %v1708_v33 }
 0x32c   : > { %v1854_v36 = vpop.f32.mrf.mxu1 }
 0x32d   : > { %v1855_v39 = vadd.f32 %v1854_v36, %v1778_v35 }
 0x32e   : > { %v1856_v40 = vpop.f32.mrf.mxu1 }
 0x32f   : > { %v1857_v48 = vadd.f32 %v1856_v40, %v1780_v37  ;;  %v1869_v50 = vmul.f32 0.2, %v1855_v39  ;;  %vm1865_vm8 = vcmp.gt.f32.partialorder %v1855_v39, 0.0 }
 0x330   : > { %v1860_v51 = vpop.f32.mrf.mxu1 }
 0x331   : > { %v1870_v52 = vmul.f32 0.2, %v1857_v48  ;;  %v1861_v53 = vadd.f32 %v1860_v51, %v1784_v41  ;;  %vm1866_vm9 = vcmp.gt.f32.partialorder %v1857_v48, 0.0  ;;  %v1873_v55 = vsel %vm1865_vm8, %v1855_v39, %v1869_v50 }
 0x332   : > { %v1862_v54 = vpop.f32.mrf.mxu1 }
 0x333   : > { %v1863_v45 = vadd.f32 %v1862_v54, %v1786_v49  ;;  %v1874_v61 = vsel %vm1866_vm9, %v1857_v48, %v1870_v52  ;;  %v1871_v56 = vmul.f32 0.2, %v1861_v53  ;;  %vm1867_vm10 = vcmp.gt.f32.partialorder %v1861_v53, 0.0 }
 0x334   : > { %1980 = vmatprep.mubr.f32.mxu0 %v1874_v61 }
 0x335   : > { %v1872_v57 = vmul.f32 0.2, %v1863_v45  ;;  %1981 = vmatmul.mubr.f32.vlgmr.msra.gmra.mxu0 %v1873_v55  ;;  %vm1868_vm11 = vcmp.gt.f32.partialorder %v1863_v45, 0.0  ;;  %v1875_v60 = vsel %vm1867_vm10, %v1861_v53, %v1871_v56 }
 0x337   : > { %v1876_v59 = vsel %vm1868_vm11, %v1863_v45, %v1872_v57 }
 0x338   : > { %1985 = vmatprep.mubr.f32.mxu1 %v1876_v59 }
 0x339   : > { %1986 = vmatmul.mubr.f32.vlgmr.msra.gmra.mxu1 %v1875_v60 }
 0x3f5   : > { %v2200_v62 = vpop.f32.mrf.mxu0 }
 0x3f7   : > { %v2201_v0 = vpop.f32.mrf.mxu0 }
 0x3f8   : > { %v2202_v1 = vadd.f32 %v2201_v0, %v2200_v62 }
 0x3f9   : > { %v2203_v2 = vpop.f32.mrf.mxu1 }
 0x3fa   : > { %v1983_v3 = vadd.f32 %v2202_v1, %v2159_v63 }
 0x3fb   : > { %v2204_v4 = vpop.f32.mrf.mxu1 }
 0x3fc   : > { %1991 = vst [vmem:[%s378_s21] sm:$0xff] %v1983_v3  ;;  %v2205_v5 = vadd.f32 %v2204_v4, %v2203_v2 }
 0x3fe   : > { %v1988_v6 = vadd.f32 %v2205_v5, %v2159_v63 }
 0x400   : > { %1992 = vst [vmem:[%s378_s21 + $0x8] sm:$0xff] %v1988_v6 }
 0x401   : > { %2568 = shalt.err (!%p2565_p6)
}
 0x402   : > { %s2569_s1 = scalar_lea.hbm %s3031_s20, 256  ;;  %s2573_s8 = scalar_lea.hbm %s3081_s7, 512 }
 0x403   : > { %p2570_p5 = scmp.ne.s32.totalorder %s3031_s20, %s2569_s1  ;;  %p2574_p9 = scmp.lt.s32.totalorder %s3031_s20, %s3081_s7 }
 0x404   : > { %p2575_p10 = scmp.lt.s32.totalorder %s2573_s8, %s2569_s1 }
 0x405   : > { %p2571_p8 = pnand %p2570_p5, %p3105_p13 }
 0x406   : > { %p2576_p11 = por %p2575_p10, %p2574_p9 }
 0x407   : > { %p2572_p1 = pneg %p2571_p8 }
 0x409   : > { %p2577_p12 = pnand %p2576_p11, %p2572_p1 }
 0x40b   : > { %2580 = shalt.err (!%p2577_p12)
}
 0x40c   : > { %s2649_s14 = smov 128   ;;  %s2650_s17 = smov 8  }
 0x40d   : > { %2264 = dma.vmem_to_hbm [thread:$0]  (%p3105_p13), %s3026_s15, 256, %s3031_s20, %s1994_s22, %s2649_s14, %s2649_s14, %s2650_s17  }
 0x40e PF: > { %s2022_s29 = sand.u32 1, %s2619_s24   ;;  %p3106_p0 = scmp.ne.s32.totalorder %s3095_s23, 0 }
 0x40f   : > { %p3107_p2 = scmp.ge.s32.totalorder %s2631_s27, 2  ;;  %s2023_s30 = scalar_lea.sflag [#allocation4], %s2022_s29 }
 0x411   : > { %p2290_p3 = pnand %p3107_p2, %p3106_p0 }
 0x413   : > { %p2291_p7 = pneg %p2290_p3 }
 0x415   : > { %2614 = dma.done.wait (%p2291_p7), %s2023_s30, 256  }
 0x416   : > { %2616 = vsyncadd (%p2291_p7), %s2023_s30, 4294967040  ;;  %p23_p4 = scmp.ge.s32.totalorder %s2790_s11, 4   ;;  %s3108_s24 = smov %s2623_s25 }
 0x417   : > { %s3109_s25 = smov %s2627_s26  ;;  %s3110_s26 = smov %s2801_s19 }
 0x418   : > { %s3111_s27 = smov %s2790_s11  ;;  %25 = sbr.rel (!%p23_p4) target bundleno = 10 (0xa), region = 117 }
 0x41d   :  { %2028 = vsyncpa [#allocation3], 1 }
 0x41e   :  { %2030 = vsyncpa [#allocation3 + $0x1], 1 }
 0x41f   :  { %2031 = vsyncpa [#allocation6], 1 }
 0x420   :  { %2032 = vsyncpa [#allocation9], 1 }
 0x421   :  { %2033 = vsyncpa [#allocation12], 1 }
 0x422   :  { %2034 = vsyncpa [#allocation4], 1 }
 0x423   :  { %2036 = vsyncpa [#allocation4 + $0x1], 1 }

</bundles_post_ra>
